<compile_context>
chip_gen: v7x
topology: tpu7x:2x2x1
jax: 0.10.0
libtpu: 0.0.40
codegen_flags: <defaults>
</compile_context>

<pallas_src>
import functools

import jax
import jax.numpy as jnp
import numpy as np
from jax import lax
from jax.experimental import pallas as pl
from jax.experimental.pallas import tpu as pltpu

IC, OC, K = 4, 3, 3            # in_channels, out_channels, kernel size
H, W = 12, 12                  # input spatial size
P = K - 1                      # "full" correlation padding for transposed conv
OH, OW = H + K - 1, W + K - 1  # 14, 14 (stride=1, padding=0, output_padding=0)
PH, PW = H + 2 * P, W + 2 * P  # 16, 16 padded input


def convt_sigmoid_kernel(x_ref, w_ref, b_ref, o_ref, xpad_ref, *, tile_n):
    # x_ref   : VMEM (tile_n, IC, H, W)     -- input block (tile_n batch images)
    # w_ref   : SMEM (OC*IC*K*K,)           -- pre-flipped, (oc, ic, kh, kw) flat
    # b_ref   : SMEM (OC,)
    # o_ref   : VMEM (tile_n, OC, OH, OW)
    # xpad_ref: VMEM (IC, PH, PW) scratch   -- zero-padded image (pad fused here)

    # Zero only the 2-wide border strips, once per grid step; the interior is
    # fully overwritten by every image's paste below.  Unconditional on purpose
    # (see header comment re: v7x megacore).
    xpad_ref[:, :P, :] = jnp.zeros((IC, P, PW), jnp.float32)
    xpad_ref[:, P + H:, :] = jnp.zeros((IC, P, PW), jnp.float32)
    xpad_ref[:, P:P + H, :P] = jnp.zeros((IC, H, P), jnp.float32)
    xpad_ref[:, P:P + H, P + W:] = jnp.zeros((IC, H, P), jnp.float32)

    def per_image(b, carry):
        # Paste image b into the interior of the zero-padded scratch.
        xpad_ref[:, P:P + H, P:P + W] = x_ref[b]

        accs = [jnp.zeros((OH, OW), jnp.float32) for _ in range(OC)]
        for ic in range(IC):
            # 9 shifted windows per input channel, reused by all OC outputs.
            wins = [xpad_ref[ic, kh:kh + OH, kw:kw + OW]
                    for kh in range(K) for kw in range(K)]
            for oc in range(OC):
                a = accs[oc]
                base = (oc * IC + ic) * K * K
                for t in range(K * K):
                    a = a + w_ref[base + t] * wins[t]
                accs[oc] = a

        for oc in range(OC):
            o_ref[b, oc] = jax.nn.sigmoid(accs[oc] + b_ref[oc])
        return carry

    # Bounded-body loop over the images in this tile (unroll=2 per review).
    lax.fori_loop(0, tile_n, per_image, 0, unroll=min(2, tile_n))


def _choose_tile_n(n):
    # Amortize per-grid-step overhead over up to 8 images, but keep >= 2 grid
    # steps when n > 1 so both v7x TensorCores get work.
    if n <= 1:
        return 1
    return max(1, min(8, -(-n // 2)))  # min(8, ceil(n/2))


def model_forward(x, weight, bias):
    """x: (N, IC, H, W) f32; weight: (IC, OC, K, K) PyTorch layout; bias: (OC,)."""
    n = x.shape[0]
    tile_n = _choose_tile_n(n)
    n_pad = pl.cdiv(n, tile_n) * tile_n
    if n_pad != n:
        x = jnp.pad(x, ((0, n_pad - n), (0, 0), (0, 0), (0, 0)))

    # Pre-fold the spatial flip and the (IC, OC) -> (OC, IC) transpose so the
    # kernel reads a plain (oc, ic, kh, kw) table (432 bytes -- negligible).
    w_flat = jnp.transpose(weight[:, :, ::-1, ::-1], (1, 0, 2, 3)).reshape(-1)

    out = pl.pallas_call(
        functools.partial(convt_sigmoid_kernel, tile_n=tile_n),
        out_shape=jax.ShapeDtypeStruct((n_pad, OC, OH, OW), jnp.float32),
        grid=(n_pad // tile_n,),
        in_specs=[
            pl.BlockSpec((tile_n, IC, H, W), lambda b: (b, 0, 0, 0)),
            pl.BlockSpec((IC * OC * K * K,), lambda b: (0,),
                         memory_space=pltpu.MemorySpace.SMEM),
            pl.BlockSpec((OC,), lambda b: (0,),
                         memory_space=pltpu.MemorySpace.SMEM),
        ],
        out_specs=pl.BlockSpec((tile_n, OC, OH, OW), lambda b: (b, 0, 0, 0)),
        scratch_shapes=[pltpu.VMEM((IC, PH, PW), jnp.float32)],
        compiler_params=pltpu.CompilerParams(
            dimension_semantics=("parallel",)),  # batch-tile axis -> both v7x TCs
    )(x, w_flat, bias)
    return out[:n] if n_pad != n else out


def reference_forward(x, weight, bias):
    """Independent scatter-form reference of ConvTranspose2d + sigmoid (numpy)."""
    xn = np.asarray(x, dtype=np.float32)
    wn = np.asarray(weight, dtype=np.float32)
    bn = np.asarray(bias, dtype=np.float32)
    n = xn.shape[0]
    out = np.zeros((n, OC, OH, OW), dtype=np.float32)
    for b in range(n):
        for oc in range(OC):
            for ic in range(IC):
                for kh in range(K):
                    for kw in range(K):
                        out[b, oc, kh:kh + H, kw:kw + W] += xn[b, ic] * wn[ic, oc, kh, kw]
            out[b, oc] += bn[oc]
    return 1.0 / (1.0 + np.exp(-out))


if __name__ == "__main__":
    key = jax.random.PRNGKey(0)
    kx, kw_, kb = jax.random.split(key, 3)

    # Deterministic synthetic parameters (ConvTranspose2d(4, 3, 3) shapes).
    fan = IC * K * K
    bound = 1.0 / np.sqrt(fan)
    weight = jax.random.uniform(kw_, (IC, OC, K, K), jnp.float32, -bound, bound)
    bias = jax.random.uniform(kb, (OC,), jnp.float32, -bound, bound)

    fwd = jax.jit(model_forward)

    # N=1 matches the module; N=5 exercises the multi-image tile (tile_n=3)
    # and the ragged-batch padding path.
    for N in (1, 5):
        x = jax.random.normal(jax.random.fold_in(kx, N), (N, IC, H, W), jnp.float32)
        out = jax.block_until_ready(fwd(x, weight, bias))
        ref = reference_forward(x, weight, bias)
        np.testing.assert_allclose(np.asarray(out), ref, rtol=1e-5, atol=1e-5)

    print("KERNEL_OK")
</pallas_src>

<mosaic_0001>
module attributes {stable_mosaic.version = 11 : i64} {
  func.func @convt_sigmoid_kernel(%arg0: i32, %arg1: memref<1x4x12x12xf32, #tpu.memory_space<vmem>>, %arg2: memref<108xf32, #tpu.memory_space<smem>>, %arg3: memref<3xf32, #tpu.memory_space<smem>>, %arg4: memref<1x3x14x14xf32, #tpu.memory_space<vmem>>, %arg5: memref<4x16x16xf32, #tpu.memory_space<vmem>>) attributes {dimension_semantics = [#tpu.dimension_semantics<parallel>], iteration_bounds = array<i64: 1>, scalar_prefetch = 0 : i64, scratch_operands = 1 : i64, tpu.core_type = #tpu.core_type<tc>, window_params = [{transform_indices = @transform_0, window_bounds = array<i64: 1, 4, 12, 12>}, {transform_indices = @transform_1, window_bounds = array<i64: 108>}, {transform_indices = @transform_2, window_bounds = array<i64: 3>}, {transform_indices = @transform_3, window_bounds = array<i64: 1, 3, 14, 14>}]} {
    %cst = arith.constant 0.000000e+00 : f32
    %0 = vector.broadcast %cst : f32 to vector<4x2x16xf32>
    %c0 = arith.constant 0 : index
    %c0_0 = arith.constant 0 : index
    %c0_1 = arith.constant 0 : index
    %1 = vector.load %arg5[%c0, %c0_0, %c0_1] : memref<4x16x16xf32, #tpu.memory_space<vmem>>, vector<4x2x16xf32>
    tpu.vector_store %arg5[%c0, %c0_0, %c0_1], %0 {strides = array<i32>} : memref<4x16x16xf32, #tpu.memory_space<vmem>>, vector<4x2x16xf32>,
    %cst_2 = arith.constant 0.000000e+00 : f32
    %2 = vector.broadcast %cst_2 : f32 to vector<4x2x16xf32>
    %c0_3 = arith.constant 0 : index
    %c14 = arith.constant 14 : index
    %c0_4 = arith.constant 0 : index
    %3 = vector.load %arg5[%c0_3, %c14, %c0_4] : memref<4x16x16xf32, #tpu.memory_space<vmem>>, vector<4x2x16xf32>
    tpu.vector_store %arg5[%c0_3, %c14, %c0_4], %2 {strides = array<i32>} : memref<4x16x16xf32, #tpu.memory_space<vmem>>, vector<4x2x16xf32>,
    %cst_5 = arith.constant 0.000000e+00 : f32
    %4 = vector.broadcast %cst_5 : f32 to vector<4x12x2xf32>
    %c0_6 = arith.constant 0 : index
    %c2 = arith.constant 2 : index
    %c0_7 = arith.constant 0 : index
    %5 = vector.load %arg5[%c0_6, %c2, %c0_7] : memref<4x16x16xf32, #tpu.memory_space<vmem>>, vector<4x12x2xf32>
    tpu.vector_store %arg5[%c0_6, %c2, %c0_7], %4 {strides = array<i32>} : memref<4x16x16xf32, #tpu.memory_space<vmem>>, vector<4x12x2xf32>,
    %cst_8 = arith.constant 0.000000e+00 : f32
    %6 = vector.broadcast %cst_8 : f32 to vector<4x12x2xf32>
    %c0_9 = arith.constant 0 : index
    %c2_10 = arith.constant 2 : index
    %c14_11 = arith.constant 14 : index
    %7 = vector.load %arg5[%c0_9, %c2_10, %c14_11] : memref<4x16x16xf32, #tpu.memory_space<vmem>>, vector<4x12x2xf32>
    tpu.vector_store %arg5[%c0_9, %c2_10, %c14_11], %6 {strides = array<i32>} : memref<4x16x16xf32, #tpu.memory_space<vmem>>, vector<4x12x2xf32>,
    %c0_i32 = arith.constant 0 : i32
    %8 = arith.index_cast %c0_i32 : i32 to index
    %c0_12 = arith.constant 0 : index
    %c0_13 = arith.constant 0 : index
    %c0_14 = arith.constant 0 : index
    %9 = vector.load %arg1[%8, %c0_12, %c0_13, %c0_14] : memref<1x4x12x12xf32, #tpu.memory_space<vmem>>, vector<1x4x12x12xf32>
    %10 = vector.shape_cast %9 : vector<1x4x12x12xf32> to vector<4x12x12xf32>
    %c0_15 = arith.constant 0 : index
    %c2_16 = arith.constant 2 : index
    %c2_17 = arith.constant 2 : index
    %11 = vector.load %arg5[%c0_15, %c2_16, %c2_17] : memref<4x16x16xf32, #tpu.memory_space<vmem>>, vector<4x12x12xf32>
    tpu.vector_store %arg5[%c0_15, %c2_16, %c2_17], %10 {strides = array<i32>} : memref<4x16x16xf32, #tpu.memory_space<vmem>>, vector<4x12x12xf32>,
    %cst_18 = arith.constant 0.000000e+00 : f32
    %12 = vector.broadcast %cst_18 : f32 to vector<14x14xf32>
    %cst_19 = arith.constant 0.000000e+00 : f32
    %13 = vector.broadcast %cst_19 : f32 to vector<14x14xf32>
    %cst_20 = arith.constant 0.000000e+00 : f32
    %14 = vector.broadcast %cst_20 : f32 to vector<14x14xf32>
    %c0_21 = arith.constant 0 : index
    %c0_22 = arith.constant 0 : index
    %c0_23 = arith.constant 0 : index
    %15 = vector.load %arg5[%c0_21, %c0_22, %c0_23] : memref<4x16x16xf32, #tpu.memory_space<vmem>>, vector<1x14x14xf32>
    %16 = vector.shape_cast %15 : vector<1x14x14xf32> to vector<14x14xf32>
    %c0_24 = arith.constant 0 : index
    %c0_25 = arith.constant 0 : index
    %c1 = arith.constant 1 : index
    %17 = vector.load %arg5[%c0_24, %c0_25, %c1] : memref<4x16x16xf32, #tpu.memory_space<vmem>>, vector<1x14x14xf32>
    %18 = vector.shape_cast %17 : vector<1x14x14xf32> to vector<14x14xf32>
    %c0_26 = arith.constant 0 : index
    %c0_27 = arith.constant 0 : index
    %c2_28 = arith.constant 2 : index
    %19 = vector.load %arg5[%c0_26, %c0_27, %c2_28] : memref<4x16x16xf32, #tpu.memory_space<vmem>>, vector<1x14x14xf32>
    %20 = vector.shape_cast %19 : vector<1x14x14xf32> to vector<14x14xf32>
    %c0_29 = arith.constant 0 : index
    %c1_30 = arith.constant 1 : index
    %c0_31 = arith.constant 0 : index
    %21 = vector.load %arg5[%c0_29, %c1_30, %c0_31] : memref<4x16x16xf32, #tpu.memory_space<vmem>>, vector<1x14x14xf32>
    %22 = vector.shape_cast %21 : vector<1x14x14xf32> to vector<14x14xf32>
    %c0_32 = arith.constant 0 : index
    %c1_33 = arith.constant 1 : index
    %c1_34 = arith.constant 1 : index
    %23 = vector.load %arg5[%c0_32, %c1_33, %c1_34] : memref<4x16x16xf32, #tpu.memory_space<vmem>>, vector<1x14x14xf32>
    %24 = vector.shape_cast %23 : vector<1x14x14xf32> to vector<14x14xf32>
    %c0_35 = arith.constant 0 : index
    %c1_36 = arith.constant 1 : index
    %c2_37 = arith.constant 2 : index
    %25 = vector.load %arg5[%c0_35, %c1_36, %c2_37] : memref<4x16x16xf32, #tpu.memory_space<vmem>>, vector<1x14x14xf32>
    %26 = vector.shape_cast %25 : vector<1x14x14xf32> to vector<14x14xf32>
    %c0_38 = arith.constant 0 : index
    %c2_39 = arith.constant 2 : index
    %c0_40 = arith.constant 0 : index
    %27 = vector.load %arg5[%c0_38, %c2_39, %c0_40] : memref<4x16x16xf32, #tpu.memory_space<vmem>>, vector<1x14x14xf32>
    %28 = vector.shape_cast %27 : vector<1x14x14xf32> to vector<14x14xf32>
    %c0_41 = arith.constant 0 : index
    %c2_42 = arith.constant 2 : index
    %c1_43 = arith.constant 1 : index
    %29 = vector.load %arg5[%c0_41, %c2_42, %c1_43] : memref<4x16x16xf32, #tpu.memory_space<vmem>>, vector<1x14x14xf32>
    %30 = vector.shape_cast %29 : vector<1x14x14xf32> to vector<14x14xf32>
    %c0_44 = arith.constant 0 : index
    %c2_45 = arith.constant 2 : index
    %c2_46 = arith.constant 2 : index
    %31 = vector.load %arg5[%c0_44, %c2_45, %c2_46] : memref<4x16x16xf32, #tpu.memory_space<vmem>>, vector<1x14x14xf32>
    %32 = vector.shape_cast %31 : vector<1x14x14xf32> to vector<14x14xf32>
    %c0_47 = arith.constant 0 : index
    %33 = memref.load %arg2[%c0_47] : memref<108xf32, #tpu.memory_space<smem>>
    %34 = vector.broadcast %33 : f32 to vector<14x14xf32>
    %35 = arith.mulf %34, %16 : vector<14x14xf32>
    %36 = arith.addf %12, %35 : vector<14x14xf32>
    %c1_48 = arith.constant 1 : index
    %37 = memref.load %arg2[%c1_48] : memref<108xf32, #tpu.memory_space<smem>>
    %38 = vector.broadcast %37 : f32 to vector<14x14xf32>
    %39 = arith.mulf %38, %18 : vector<14x14xf32>
    %40 = arith.addf %36, %39 : vector<14x14xf32>
    %c2_49 = arith.constant 2 : index
    %41 = memref.load %arg2[%c2_49] : memref<108xf32, #tpu.memory_space<smem>>
    %42 = vector.broadcast %41 : f32 to vector<14x14xf32>
    %43 = arith.mulf %42, %20 : vector<14x14xf32>
    %44 = arith.addf %40, %43 : vector<14x14xf32>
    %c3 = arith.constant 3 : index
    %45 = memref.load %arg2[%c3] : memref<108xf32, #tpu.memory_space<smem>>
    %46 = vector.broadcast %45 : f32 to vector<14x14xf32>
    %47 = arith.mulf %46, %22 : vector<14x14xf32>
    %48 = arith.addf %44, %47 : vector<14x14xf32>
    %c4 = arith.constant 4 : index
    %49 = memref.load %arg2[%c4] : memref<108xf32, #tpu.memory_space<smem>>
    %50 = vector.broadcast %49 : f32 to vector<14x14xf32>
    %51 = arith.mulf %50, %24 : vector<14x14xf32>
    %52 = arith.addf %48, %51 : vector<14x14xf32>
    %c5 = arith.constant 5 : index
    %53 = memref.load %arg2[%c5] : memref<108xf32, #tpu.memory_space<smem>>
    %54 = vector.broadcast %53 : f32 to vector<14x14xf32>
    %55 = arith.mulf %54, %26 : vector<14x14xf32>
    %56 = arith.addf %52, %55 : vector<14x14xf32>
    %c6 = arith.constant 6 : index
    %57 = memref.load %arg2[%c6] : memref<108xf32, #tpu.memory_space<smem>>
    %58 = vector.broadcast %57 : f32 to vector<14x14xf32>
    %59 = arith.mulf %58, %28 : vector<14x14xf32>
    %60 = arith.addf %56, %59 : vector<14x14xf32>
    %c7 = arith.constant 7 : index
    %61 = memref.load %arg2[%c7] : memref<108xf32, #tpu.memory_space<smem>>
    %62 = vector.broadcast %61 : f32 to vector<14x14xf32>
    %63 = arith.mulf %62, %30 : vector<14x14xf32>
    %64 = arith.addf %60, %63 : vector<14x14xf32>
    %c8 = arith.constant 8 : index
    %65 = memref.load %arg2[%c8] : memref<108xf32, #tpu.memory_space<smem>>
    %66 = vector.broadcast %65 : f32 to vector<14x14xf32>
    %67 = arith.mulf %66, %32 : vector<14x14xf32>
    %68 = arith.addf %64, %67 : vector<14x14xf32>
    %c36 = arith.constant 36 : index
    %69 = memref.load %arg2[%c36] : memref<108xf32, #tpu.memory_space<smem>>
    %70 = vector.broadcast %69 : f32 to vector<14x14xf32>
    %71 = arith.mulf %70, %16 : vector<14x14xf32>
    %72 = arith.addf %13, %71 : vector<14x14xf32>
    %c37 = arith.constant 37 : index
    %73 = memref.load %arg2[%c37] : memref<108xf32, #tpu.memory_space<smem>>
    %74 = vector.broadcast %73 : f32 to vector<14x14xf32>
    %75 = arith.mulf %74, %18 : vector<14x14xf32>
    %76 = arith.addf %72, %75 : vector<14x14xf32>
    %c38 = arith.constant 38 : index
    %77 = memref.load %arg2[%c38] : memref<108xf32, #tpu.memory_space<smem>>
    %78 = vector.broadcast %77 : f32 to vector<14x14xf32>
    %79 = arith.mulf %78, %20 : vector<14x14xf32>
    %80 = arith.addf %76, %79 : vector<14x14xf32>
    %c39 = arith.constant 39 : index
    %81 = memref.load %arg2[%c39] : memref<108xf32, #tpu.memory_space<smem>>
    %82 = vector.broadcast %81 : f32 to vector<14x14xf32>
    %83 = arith.mulf %82, %22 : vector<14x14xf32>
    %84 = arith.addf %80, %83 : vector<14x14xf32>
    %c40 = arith.constant 40 : index
    %85 = memref.load %arg2[%c40] : memref<108xf32, #tpu.memory_space<smem>>
    %86 = vector.broadcast %85 : f32 to vector<14x14xf32>
    %87 = arith.mulf %86, %24 : vector<14x14xf32>
    %88 = arith.addf %84, %87 : vector<14x14xf32>
    %c41 = arith.constant 41 : index
    %89 = memref.load %arg2[%c41] : memref<108xf32, #tpu.memory_space<smem>>
    %90 = vector.broadcast %89 : f32 to vector<14x14xf32>
    %91 = arith.mulf %90, %26 : vector<14x14xf32>
    %92 = arith.addf %88, %91 : vector<14x14xf32>
    %c42 = arith.constant 42 : index
    %93 = memref.load %arg2[%c42] : memref<108xf32, #tpu.memory_space<smem>>
    %94 = vector.broadcast %93 : f32 to vector<14x14xf32>
    %95 = arith.mulf %94, %28 : vector<14x14xf32>
    %96 = arith.addf %92, %95 : vector<14x14xf32>
    %c43 = arith.constant 43 : index
    %97 = memref.load %arg2[%c43] : memref<108xf32, #tpu.memory_space<smem>>
    %98 = vector.broadcast %97 : f32 to vector<14x14xf32>
    %99 = arith.mulf %98, %30 : vector<14x14xf32>
    %100 = arith.addf %96, %99 : vector<14x14xf32>
    %c44 = arith.constant 44 : index
    %101 = memref.load %arg2[%c44] : memref<108xf32, #tpu.memory_space<smem>>
    %102 = vector.broadcast %101 : f32 to vector<14x14xf32>
    %103 = arith.mulf %102, %32 : vector<14x14xf32>
    %104 = arith.addf %100, %103 : vector<14x14xf32>
    %c72 = arith.constant 72 : index
    %105 = memref.load %arg2[%c72] : memref<108xf32, #tpu.memory_space<smem>>
    %106 = vector.broadcast %105 : f32 to vector<14x14xf32>
    %107 = arith.mulf %106, %16 : vector<14x14xf32>
    %108 = arith.addf %14, %107 : vector<14x14xf32>
    %c73 = arith.constant 73 : index
    %109 = memref.load %arg2[%c73] : memref<108xf32, #tpu.memory_space<smem>>
    %110 = vector.broadcast %109 : f32 to vector<14x14xf32>
    %111 = arith.mulf %110, %18 : vector<14x14xf32>
    %112 = arith.addf %108, %111 : vector<14x14xf32>
    %c74 = arith.constant 74 : index
    %113 = memref.load %arg2[%c74] : memref<108xf32, #tpu.memory_space<smem>>
    %114 = vector.broadcast %113 : f32 to vector<14x14xf32>
    %115 = arith.mulf %114, %20 : vector<14x14xf32>
    %116 = arith.addf %112, %115 : vector<14x14xf32>
    %c75 = arith.constant 75 : index
    %117 = memref.load %arg2[%c75] : memref<108xf32, #tpu.memory_space<smem>>
    %118 = vector.broadcast %117 : f32 to vector<14x14xf32>
    %119 = arith.mulf %118, %22 : vector<14x14xf32>
    %120 = arith.addf %116, %119 : vector<14x14xf32>
    %c76 = arith.constant 76 : index
    %121 = memref.load %arg2[%c76] : memref<108xf32, #tpu.memory_space<smem>>
    %122 = vector.broadcast %121 : f32 to vector<14x14xf32>
    %123 = arith.mulf %122, %24 : vector<14x14xf32>
    %124 = arith.addf %120, %123 : vector<14x14xf32>
    %c77 = arith.constant 77 : index
    %125 = memref.load %arg2[%c77] : memref<108xf32, #tpu.memory_space<smem>>
    %126 = vector.broadcast %125 : f32 to vector<14x14xf32>
    %127 = arith.mulf %126, %26 : vector<14x14xf32>
    %128 = arith.addf %124, %127 : vector<14x14xf32>
    %c78 = arith.constant 78 : index
    %129 = memref.load %arg2[%c78] : memref<108xf32, #tpu.memory_space<smem>>
    %130 = vector.broadcast %129 : f32 to vector<14x14xf32>
    %131 = arith.mulf %130, %28 : vector<14x14xf32>
    %132 = arith.addf %128, %131 : vector<14x14xf32>
    %c79 = arith.constant 79 : index
    %133 = memref.load %arg2[%c79] : memref<108xf32, #tpu.memory_space<smem>>
    %134 = vector.broadcast %133 : f32 to vector<14x14xf32>
    %135 = arith.mulf %134, %30 : vector<14x14xf32>
    %136 = arith.addf %132, %135 : vector<14x14xf32>
    %c80 = arith.constant 80 : index
    %137 = memref.load %arg2[%c80] : memref<108xf32, #tpu.memory_space<smem>>
    %138 = vector.broadcast %137 : f32 to vector<14x14xf32>
    %139 = arith.mulf %138, %32 : vector<14x14xf32>
    %140 = arith.addf %136, %139 : vector<14x14xf32>
    %c1_50 = arith.constant 1 : index
    %c0_51 = arith.constant 0 : index
    %c0_52 = arith.constant 0 : index
    %141 = vector.load %arg5[%c1_50, %c0_51, %c0_52] : memref<4x16x16xf32, #tpu.memory_space<vmem>>, vector<1x14x14xf32>
    %142 = vector.shape_cast %141 : vector<1x14x14xf32> to vector<14x14xf32>
    %c1_53 = arith.constant 1 : index
    %c0_54 = arith.constant 0 : index
    %c1_55 = arith.constant 1 : index
    %143 = vector.load %arg5[%c1_53, %c0_54, %c1_55] : memref<4x16x16xf32, #tpu.memory_space<vmem>>, vector<1x14x14xf32>
    %144 = vector.shape_cast %143 : vector<1x14x14xf32> to vector<14x14xf32>
    %c1_56 = arith.constant 1 : index
    %c0_57 = arith.constant 0 : index
    %c2_58 = arith.constant 2 : index
    %145 = vector.load %arg5[%c1_56, %c0_57, %c2_58] : memref<4x16x16xf32, #tpu.memory_space<vmem>>, vector<1x14x14xf32>
    %146 = vector.shape_cast %145 : vector<1x14x14xf32> to vector<14x14xf32>
    %c1_59 = arith.constant 1 : index
    %c1_60 = arith.constant 1 : index
    %c0_61 = arith.constant 0 : index
    %147 = vector.load %arg5[%c1_59, %c1_60, %c0_61] : memref<4x16x16xf32, #tpu.memory_space<vmem>>, vector<1x14x14xf32>
    %148 = vector.shape_cast %147 : vector<1x14x14xf32> to vector<14x14xf32>
    %c1_62 = arith.constant 1 : index
    %c1_63 = arith.constant 1 : index
    %c1_64 = arith.constant 1 : index
    %149 = vector.load %arg5[%c1_62, %c1_63, %c1_64] : memref<4x16x16xf32, #tpu.memory_space<vmem>>, vector<1x14x14xf32>
    %150 = vector.shape_cast %149 : vector<1x14x14xf32> to vector<14x14xf32>
    %c1_65 = arith.constant 1 : index
    %c1_66 = arith.constant 1 : index
    %c2_67 = arith.constant 2 : index
    %151 = vector.load %arg5[%c1_65, %c1_66, %c2_67] : memref<4x16x16xf32, #tpu.memory_space<vmem>>, vector<1x14x14xf32>
    %152 = vector.shape_cast %151 : vector<1x14x14xf32> to vector<14x14xf32>
    %c1_68 = arith.constant 1 : index
    %c2_69 = arith.constant 2 : index
    %c0_70 = arith.constant 0 : index
    %153 = vector.load %arg5[%c1_68, %c2_69, %c0_70] : memref<4x16x16xf32, #tpu.memory_space<vmem>>, vector<1x14x14xf32>
    %154 = vector.shape_cast %153 : vector<1x14x14xf32> to vector<14x14xf32>
    %c1_71 = arith.constant 1 : index
    %c2_72 = arith.constant 2 : index
    %c1_73 = arith.constant 1 : index
    %155 = vector.load %arg5[%c1_71, %c2_72, %c1_73] : memref<4x16x16xf32, #tpu.memory_space<vmem>>, vector<1x14x14xf32>
    %156 = vector.shape_cast %155 : vector<1x14x14xf32> to vector<14x14xf32>
    %c1_74 = arith.constant 1 : index
    %c2_75 = arith.constant 2 : index
    %c2_76 = arith.constant 2 : index
    %157 = vector.load %arg5[%c1_74, %c2_75, %c2_76] : memref<4x16x16xf32, #tpu.memory_space<vmem>>, vector<1x14x14xf32>
    %158 = vector.shape_cast %157 : vector<1x14x14xf32> to vector<14x14xf32>
    %c9 = arith.constant 9 : index
    %159 = memref.load %arg2[%c9] : memref<108xf32, #tpu.memory_space<smem>>
    %160 = vector.broadcast %159 : f32 to vector<14x14xf32>
    %161 = arith.mulf %160, %142 : vector<14x14xf32>
    %162 = arith.addf %68, %161 : vector<14x14xf32>
    %c10 = arith.constant 10 : index
    %163 = memref.load %arg2[%c10] : memref<108xf32, #tpu.memory_space<smem>>
    %164 = vector.broadcast %163 : f32 to vector<14x14xf32>
    %165 = arith.mulf %164, %144 : vector<14x14xf32>
    %166 = arith.addf %162, %165 : vector<14x14xf32>
    %c11 = arith.constant 11 : index
    %167 = memref.load %arg2[%c11] : memref<108xf32, #tpu.memory_space<smem>>
    %168 = vector.broadcast %167 : f32 to vector<14x14xf32>
    %169 = arith.mulf %168, %146 : vector<14x14xf32>
    %170 = arith.addf %166, %169 : vector<14x14xf32>
    %c12 = arith.constant 12 : index
    %171 = memref.load %arg2[%c12] : memref<108xf32, #tpu.memory_space<smem>>
    %172 = vector.broadcast %171 : f32 to vector<14x14xf32>
    %173 = arith.mulf %172, %148 : vector<14x14xf32>
    %174 = arith.addf %170, %173 : vector<14x14xf32>
    %c13 = arith.constant 13 : index
    %175 = memref.load %arg2[%c13] : memref<108xf32, #tpu.memory_space<smem>>
    %176 = vector.broadcast %175 : f32 to vector<14x14xf32>
    %177 = arith.mulf %176, %150 : vector<14x14xf32>
    %178 = arith.addf %174, %177 : vector<14x14xf32>
    %c14_77 = arith.constant 14 : index
    %179 = memref.load %arg2[%c14_77] : memref<108xf32, #tpu.memory_space<smem>>
    %180 = vector.broadcast %179 : f32 to vector<14x14xf32>
    %181 = arith.mulf %180, %152 : vector<14x14xf32>
    %182 = arith.addf %178, %181 : vector<14x14xf32>
    %c15 = arith.constant 15 : index
    %183 = memref.load %arg2[%c15] : memref<108xf32, #tpu.memory_space<smem>>
    %184 = vector.broadcast %183 : f32 to vector<14x14xf32>
    %185 = arith.mulf %184, %154 : vector<14x14xf32>
    %186 = arith.addf %182, %185 : vector<14x14xf32>
    %c16 = arith.constant 16 : index
    %187 = memref.load %arg2[%c16] : memref<108xf32, #tpu.memory_space<smem>>
    %188 = vector.broadcast %187 : f32 to vector<14x14xf32>
    %189 = arith.mulf %188, %156 : vector<14x14xf32>
    %190 = arith.addf %186, %189 : vector<14x14xf32>
    %c17 = arith.constant 17 : index
    %191 = memref.load %arg2[%c17] : memref<108xf32, #tpu.memory_space<smem>>
    %192 = vector.broadcast %191 : f32 to vector<14x14xf32>
    %193 = arith.mulf %192, %158 : vector<14x14xf32>
    %194 = arith.addf %190, %193 : vector<14x14xf32>
    %c45 = arith.constant 45 : index
    %195 = memref.load %arg2[%c45] : memref<108xf32, #tpu.memory_space<smem>>
    %196 = vector.broadcast %195 : f32 to vector<14x14xf32>
    %197 = arith.mulf %196, %142 : vector<14x14xf32>
    %198 = arith.addf %104, %197 : vector<14x14xf32>
    %c46 = arith.constant 46 : index
    %199 = memref.load %arg2[%c46] : memref<108xf32, #tpu.memory_space<smem>>
    %200 = vector.broadcast %199 : f32 to vector<14x14xf32>
    %201 = arith.mulf %200, %144 : vector<14x14xf32>
    %202 = arith.addf %198, %201 : vector<14x14xf32>
    %c47 = arith.constant 47 : index
    %203 = memref.load %arg2[%c47] : memref<108xf32, #tpu.memory_space<smem>>
    %204 = vector.broadcast %203 : f32 to vector<14x14xf32>
    %205 = arith.mulf %204, %146 : vector<14x14xf32>
    %206 = arith.addf %202, %205 : vector<14x14xf32>
    %c48 = arith.constant 48 : index
    %207 = memref.load %arg2[%c48] : memref<108xf32, #tpu.memory_space<smem>>
    %208 = vector.broadcast %207 : f32 to vector<14x14xf32>
    %209 = arith.mulf %208, %148 : vector<14x14xf32>
    %210 = arith.addf %206, %209 : vector<14x14xf32>
    %c49 = arith.constant 49 : index
    %211 = memref.load %arg2[%c49] : memref<108xf32, #tpu.memory_space<smem>>
    %212 = vector.broadcast %211 : f32 to vector<14x14xf32>
    %213 = arith.mulf %212, %150 : vector<14x14xf32>
    %214 = arith.addf %210, %213 : vector<14x14xf32>
    %c50 = arith.constant 50 : index
    %215 = memref.load %arg2[%c50] : memref<108xf32, #tpu.memory_space<smem>>
    %216 = vector.broadcast %215 : f32 to vector<14x14xf32>
    %217 = arith.mulf %216, %152 : vector<14x14xf32>
    %218 = arith.addf %214, %217 : vector<14x14xf32>
    %c51 = arith.constant 51 : index
    %219 = memref.load %arg2[%c51] : memref<108xf32, #tpu.memory_space<smem>>
    %220 = vector.broadcast %219 : f32 to vector<14x14xf32>
    %221 = arith.mulf %220, %154 : vector<14x14xf32>
    %222 = arith.addf %218, %221 : vector<14x14xf32>
    %c52 = arith.constant 52 : index
    %223 = memref.load %arg2[%c52] : memref<108xf32, #tpu.memory_space<smem>>
    %224 = vector.broadcast %223 : f32 to vector<14x14xf32>
    %225 = arith.mulf %224, %156 : vector<14x14xf32>
    %226 = arith.addf %222, %225 : vector<14x14xf32>
    %c53 = arith.constant 53 : index
    %227 = memref.load %arg2[%c53] : memref<108xf32, #tpu.memory_space<smem>>
    %228 = vector.broadcast %227 : f32 to vector<14x14xf32>
    %229 = arith.mulf %228, %158 : vector<14x14xf32>
    %230 = arith.addf %226, %229 : vector<14x14xf32>
    %c81 = arith.constant 81 : index
    %231 = memref.load %arg2[%c81] : memref<108xf32, #tpu.memory_space<smem>>
    %232 = vector.broadcast %231 : f32 to vector<14x14xf32>
    %233 = arith.mulf %232, %142 : vector<14x14xf32>
    %234 = arith.addf %140, %233 : vector<14x14xf32>
    %c82 = arith.constant 82 : index
    %235 = memref.load %arg2[%c82] : memref<108xf32, #tpu.memory_space<smem>>
    %236 = vector.broadcast %235 : f32 to vector<14x14xf32>
    %237 = arith.mulf %236, %144 : vector<14x14xf32>
    %238 = arith.addf %234, %237 : vector<14x14xf32>
    %c83 = arith.constant 83 : index
    %239 = memref.load %arg2[%c83] : memref<108xf32, #tpu.memory_space<smem>>
    %240 = vector.broadcast %239 : f32 to vector<14x14xf32>
    %241 = arith.mulf %240, %146 : vector<14x14xf32>
    %242 = arith.addf %238, %241 : vector<14x14xf32>
    %c84 = arith.constant 84 : index
    %243 = memref.load %arg2[%c84] : memref<108xf32, #tpu.memory_space<smem>>
    %244 = vector.broadcast %243 : f32 to vector<14x14xf32>
    %245 = arith.mulf %244, %148 : vector<14x14xf32>
    %246 = arith.addf %242, %245 : vector<14x14xf32>
    %c85 = arith.constant 85 : index
    %247 = memref.load %arg2[%c85] : memref<108xf32, #tpu.memory_space<smem>>
    %248 = vector.broadcast %247 : f32 to vector<14x14xf32>
    %249 = arith.mulf %248, %150 : vector<14x14xf32>
    %250 = arith.addf %246, %249 : vector<14x14xf32>
    %c86 = arith.constant 86 : index
    %251 = memref.load %arg2[%c86] : memref<108xf32, #tpu.memory_space<smem>>
    %252 = vector.broadcast %251 : f32 to vector<14x14xf32>
    %253 = arith.mulf %252, %152 : vector<14x14xf32>
    %254 = arith.addf %250, %253 : vector<14x14xf32>
    %c87 = arith.constant 87 : index
    %255 = memref.load %arg2[%c87] : memref<108xf32, #tpu.memory_space<smem>>
    %256 = vector.broadcast %255 : f32 to vector<14x14xf32>
    %257 = arith.mulf %256, %154 : vector<14x14xf32>
    %258 = arith.addf %254, %257 : vector<14x14xf32>
    %c88 = arith.constant 88 : index
    %259 = memref.load %arg2[%c88] : memref<108xf32, #tpu.memory_space<smem>>
    %260 = vector.broadcast %259 : f32 to vector<14x14xf32>
    %261 = arith.mulf %260, %156 : vector<14x14xf32>
    %262 = arith.addf %258, %261 : vector<14x14xf32>
    %c89 = arith.constant 89 : index
    %263 = memref.load %arg2[%c89] : memref<108xf32, #tpu.memory_space<smem>>
    %264 = vector.broadcast %263 : f32 to vector<14x14xf32>
    %265 = arith.mulf %264, %158 : vector<14x14xf32>
    %266 = arith.addf %262, %265 : vector<14x14xf32>
    %c2_78 = arith.constant 2 : index
    %c0_79 = arith.constant 0 : index
    %c0_80 = arith.constant 0 : index
    %267 = vector.load %arg5[%c2_78, %c0_79, %c0_80] : memref<4x16x16xf32, #tpu.memory_space<vmem>>, vector<1x14x14xf32>
    %268 = vector.shape_cast %267 : vector<1x14x14xf32> to vector<14x14xf32>
    %c2_81 = arith.constant 2 : index
    %c0_82 = arith.constant 0 : index
    %c1_83 = arith.constant 1 : index
    %269 = vector.load %arg5[%c2_81, %c0_82, %c1_83] : memref<4x16x16xf32, #tpu.memory_space<vmem>>, vector<1x14x14xf32>
    %270 = vector.shape_cast %269 : vector<1x14x14xf32> to vector<14x14xf32>
    %c2_84 = arith.constant 2 : index
    %c0_85 = arith.constant 0 : index
    %c2_86 = arith.constant 2 : index
    %271 = vector.load %arg5[%c2_84, %c0_85, %c2_86] : memref<4x16x16xf32, #tpu.memory_space<vmem>>, vector<1x14x14xf32>
    %272 = vector.shape_cast %271 : vector<1x14x14xf32> to vector<14x14xf32>
    %c2_87 = arith.constant 2 : index
    %c1_88 = arith.constant 1 : index
    %c0_89 = arith.constant 0 : index
    %273 = vector.load %arg5[%c2_87, %c1_88, %c0_89] : memref<4x16x16xf32, #tpu.memory_space<vmem>>, vector<1x14x14xf32>
    %274 = vector.shape_cast %273 : vector<1x14x14xf32> to vector<14x14xf32>
    %c2_90 = arith.constant 2 : index
    %c1_91 = arith.constant 1 : index
    %c1_92 = arith.constant 1 : index
    %275 = vector.load %arg5[%c2_90, %c1_91, %c1_92] : memref<4x16x16xf32, #tpu.memory_space<vmem>>, vector<1x14x14xf32>
    %276 = vector.shape_cast %275 : vector<1x14x14xf32> to vector<14x14xf32>
    %c2_93 = arith.constant 2 : index
    %c1_94 = arith.constant 1 : index
    %c2_95 = arith.constant 2 : index
    %277 = vector.load %arg5[%c2_93, %c1_94, %c2_95] : memref<4x16x16xf32, #tpu.memory_space<vmem>>, vector<1x14x14xf32>
    %278 = vector.shape_cast %277 : vector<1x14x14xf32> to vector<14x14xf32>
    %c2_96 = arith.constant 2 : index
    %c2_97 = arith.constant 2 : index
    %c0_98 = arith.constant 0 : index
    %279 = vector.load %arg5[%c2_96, %c2_97, %c0_98] : memref<4x16x16xf32, #tpu.memory_space<vmem>>, vector<1x14x14xf32>
    %280 = vector.shape_cast %279 : vector<1x14x14xf32> to vector<14x14xf32>
    %c2_99 = arith.constant 2 : index
    %c2_100 = arith.constant 2 : index
    %c1_101 = arith.constant 1 : index
    %281 = vector.load %arg5[%c2_99, %c2_100, %c1_101] : memref<4x16x16xf32, #tpu.memory_space<vmem>>, vector<1x14x14xf32>
    %282 = vector.shape_cast %281 : vector<1x14x14xf32> to vector<14x14xf32>
    %c2_102 = arith.constant 2 : index
    %c2_103 = arith.constant 2 : index
    %c2_104 = arith.constant 2 : index
    %283 = vector.load %arg5[%c2_102, %c2_103, %c2_104] : memref<4x16x16xf32, #tpu.memory_space<vmem>>, vector<1x14x14xf32>
    %284 = vector.shape_cast %283 : vector<1x14x14xf32> to vector<14x14xf32>
    %c18 = arith.constant 18 : index
    %285 = memref.load %arg2[%c18] : memref<108xf32, #tpu.memory_space<smem>>
    %286 = vector.broadcast %285 : f32 to vector<14x14xf32>
    %287 = arith.mulf %286, %268 : vector<14x14xf32>
    %288 = arith.addf %194, %287 : vector<14x14xf32>
    %c19 = arith.constant 19 : index
    %289 = memref.load %arg2[%c19] : memref<108xf32, #tpu.memory_space<smem>>
    %290 = vector.broadcast %289 : f32 to vector<14x14xf32>
    %291 = arith.mulf %290, %270 : vector<14x14xf32>
    %292 = arith.addf %288, %291 : vector<14x14xf32>
    %c20 = arith.constant 20 : index
    %293 = memref.load %arg2[%c20] : memref<108xf32, #tpu.memory_space<smem>>
    %294 = vector.broadcast %293 : f32 to vector<14x14xf32>
    %295 = arith.mulf %294, %272 : vector<14x14xf32>
    %296 = arith.addf %292, %295 : vector<14x14xf32>
    %c21 = arith.constant 21 : index
    %297 = memref.load %arg2[%c21] : memref<108xf32, #tpu.memory_space<smem>>
    %298 = vector.broadcast %297 : f32 to vector<14x14xf32>
    %299 = arith.mulf %298, %274 : vector<14x14xf32>
    %300 = arith.addf %296, %299 : vector<14x14xf32>
    %c22 = arith.constant 22 : index
    %301 = memref.load %arg2[%c22] : memref<108xf32, #tpu.memory_space<smem>>
    %302 = vector.broadcast %301 : f32 to vector<14x14xf32>
    %303 = arith.mulf %302, %276 : vector<14x14xf32>
    %304 = arith.addf %300, %303 : vector<14x14xf32>
    %c23 = arith.constant 23 : index
    %305 = memref.load %arg2[%c23] : memref<108xf32, #tpu.memory_space<smem>>
    %306 = vector.broadcast %305 : f32 to vector<14x14xf32>
    %307 = arith.mulf %306, %278 : vector<14x14xf32>
    %308 = arith.addf %304, %307 : vector<14x14xf32>
    %c24 = arith.constant 24 : index
    %309 = memref.load %arg2[%c24] : memref<108xf32, #tpu.memory_space<smem>>
    %310 = vector.broadcast %309 : f32 to vector<14x14xf32>
    %311 = arith.mulf %310, %280 : vector<14x14xf32>
    %312 = arith.addf %308, %311 : vector<14x14xf32>
    %c25 = arith.constant 25 : index
    %313 = memref.load %arg2[%c25] : memref<108xf32, #tpu.memory_space<smem>>
    %314 = vector.broadcast %313 : f32 to vector<14x14xf32>
    %315 = arith.mulf %314, %282 : vector<14x14xf32>
    %316 = arith.addf %312, %315 : vector<14x14xf32>
    %c26 = arith.constant 26 : index
    %317 = memref.load %arg2[%c26] : memref<108xf32, #tpu.memory_space<smem>>
    %318 = vector.broadcast %317 : f32 to vector<14x14xf32>
    %319 = arith.mulf %318, %284 : vector<14x14xf32>
    %320 = arith.addf %316, %319 : vector<14x14xf32>
    %c54 = arith.constant 54 : index
    %321 = memref.load %arg2[%c54] : memref<108xf32, #tpu.memory_space<smem>>
    %322 = vector.broadcast %321 : f32 to vector<14x14xf32>
    %323 = arith.mulf %322, %268 : vector<14x14xf32>
    %324 = arith.addf %230, %323 : vector<14x14xf32>
    %c55 = arith.constant 55 : index
    %325 = memref.load %arg2[%c55] : memref<108xf32, #tpu.memory_space<smem>>
    %326 = vector.broadcast %325 : f32 to vector<14x14xf32>
    %327 = arith.mulf %326, %270 : vector<14x14xf32>
    %328 = arith.addf %324, %327 : vector<14x14xf32>
    %c56 = arith.constant 56 : index
    %329 = memref.load %arg2[%c56] : memref<108xf32, #tpu.memory_space<smem>>
    %330 = vector.broadcast %329 : f32 to vector<14x14xf32>
    %331 = arith.mulf %330, %272 : vector<14x14xf32>
    %332 = arith.addf %328, %331 : vector<14x14xf32>
    %c57 = arith.constant 57 : index
    %333 = memref.load %arg2[%c57] : memref<108xf32, #tpu.memory_space<smem>>
    %334 = vector.broadcast %333 : f32 to vector<14x14xf32>
    %335 = arith.mulf %334, %274 : vector<14x14xf32>
    %336 = arith.addf %332, %335 : vector<14x14xf32>
    %c58 = arith.constant 58 : index
    %337 = memref.load %arg2[%c58] : memref<108xf32, #tpu.memory_space<smem>>
    %338 = vector.broadcast %337 : f32 to vector<14x14xf32>
    %339 = arith.mulf %338, %276 : vector<14x14xf32>
    %340 = arith.addf %336, %339 : vector<14x14xf32>
    %c59 = arith.constant 59 : index
    %341 = memref.load %arg2[%c59] : memref<108xf32, #tpu.memory_space<smem>>
    %342 = vector.broadcast %341 : f32 to vector<14x14xf32>
    %343 = arith.mulf %342, %278 : vector<14x14xf32>
    %344 = arith.addf %340, %343 : vector<14x14xf32>
    %c60 = arith.constant 60 : index
    %345 = memref.load %arg2[%c60] : memref<108xf32, #tpu.memory_space<smem>>
    %346 = vector.broadcast %345 : f32 to vector<14x14xf32>
    %347 = arith.mulf %346, %280 : vector<14x14xf32>
    %348 = arith.addf %344, %347 : vector<14x14xf32>
    %c61 = arith.constant 61 : index
    %349 = memref.load %arg2[%c61] : memref<108xf32, #tpu.memory_space<smem>>
    %350 = vector.broadcast %349 : f32 to vector<14x14xf32>
    %351 = arith.mulf %350, %282 : vector<14x14xf32>
    %352 = arith.addf %348, %351 : vector<14x14xf32>
    %c62 = arith.constant 62 : index
    %353 = memref.load %arg2[%c62] : memref<108xf32, #tpu.memory_space<smem>>
    %354 = vector.broadcast %353 : f32 to vector<14x14xf32>
    %355 = arith.mulf %354, %284 : vector<14x14xf32>
    %356 = arith.addf %352, %355 : vector<14x14xf32>
    %c90 = arith.constant 90 : index
    %357 = memref.load %arg2[%c90] : memref<108xf32, #tpu.memory_space<smem>>
    %358 = vector.broadcast %357 : f32 to vector<14x14xf32>
    %359 = arith.mulf %358, %268 : vector<14x14xf32>
    %360 = arith.addf %266, %359 : vector<14x14xf32>
    %c91 = arith.constant 91 : index
    %361 = memref.load %arg2[%c91] : memref<108xf32, #tpu.memory_space<smem>>
    %362 = vector.broadcast %361 : f32 to vector<14x14xf32>
    %363 = arith.mulf %362, %270 : vector<14x14xf32>
    %364 = arith.addf %360, %363 : vector<14x14xf32>
    %c92 = arith.constant 92 : index
    %365 = memref.load %arg2[%c92] : memref<108xf32, #tpu.memory_space<smem>>
    %366 = vector.broadcast %365 : f32 to vector<14x14xf32>
    %367 = arith.mulf %366, %272 : vector<14x14xf32>
    %368 = arith.addf %364, %367 : vector<14x14xf32>
    %c93 = arith.constant 93 : index
    %369 = memref.load %arg2[%c93] : memref<108xf32, #tpu.memory_space<smem>>
    %370 = vector.broadcast %369 : f32 to vector<14x14xf32>
    %371 = arith.mulf %370, %274 : vector<14x14xf32>
    %372 = arith.addf %368, %371 : vector<14x14xf32>
    %c94 = arith.constant 94 : index
    %373 = memref.load %arg2[%c94] : memref<108xf32, #tpu.memory_space<smem>>
    %374 = vector.broadcast %373 : f32 to vector<14x14xf32>
    %375 = arith.mulf %374, %276 : vector<14x14xf32>
    %376 = arith.addf %372, %375 : vector<14x14xf32>
    %c95 = arith.constant 95 : index
    %377 = memref.load %arg2[%c95] : memref<108xf32, #tpu.memory_space<smem>>
    %378 = vector.broadcast %377 : f32 to vector<14x14xf32>
    %379 = arith.mulf %378, %278 : vector<14x14xf32>
    %380 = arith.addf %376, %379 : vector<14x14xf32>
    %c96 = arith.constant 96 : index
    %381 = memref.load %arg2[%c96] : memref<108xf32, #tpu.memory_space<smem>>
    %382 = vector.broadcast %381 : f32 to vector<14x14xf32>
    %383 = arith.mulf %382, %280 : vector<14x14xf32>
    %384 = arith.addf %380, %383 : vector<14x14xf32>
    %c97 = arith.constant 97 : index
    %385 = memref.load %arg2[%c97] : memref<108xf32, #tpu.memory_space<smem>>
    %386 = vector.broadcast %385 : f32 to vector<14x14xf32>
    %387 = arith.mulf %386, %282 : vector<14x14xf32>
    %388 = arith.addf %384, %387 : vector<14x14xf32>
    %c98 = arith.constant 98 : index
    %389 = memref.load %arg2[%c98] : memref<108xf32, #tpu.memory_space<smem>>
    %390 = vector.broadcast %389 : f32 to vector<14x14xf32>
    %391 = arith.mulf %390, %284 : vector<14x14xf32>
    %392 = arith.addf %388, %391 : vector<14x14xf32>
    %c3_105 = arith.constant 3 : index
    %c0_106 = arith.constant 0 : index
    %c0_107 = arith.constant 0 : index
    %393 = vector.load %arg5[%c3_105, %c0_106, %c0_107] : memref<4x16x16xf32, #tpu.memory_space<vmem>>, vector<1x14x14xf32>
    %394 = vector.shape_cast %393 : vector<1x14x14xf32> to vector<14x14xf32>
    %c3_108 = arith.constant 3 : index
    %c0_109 = arith.constant 0 : index
    %c1_110 = arith.constant 1 : index
    %395 = vector.load %arg5[%c3_108, %c0_109, %c1_110] : memref<4x16x16xf32, #tpu.memory_space<vmem>>, vector<1x14x14xf32>
    %396 = vector.shape_cast %395 : vector<1x14x14xf32> to vector<14x14xf32>
    %c3_111 = arith.constant 3 : index
    %c0_112 = arith.constant 0 : index
    %c2_113 = arith.constant 2 : index
    %397 = vector.load %arg5[%c3_111, %c0_112, %c2_113] : memref<4x16x16xf32, #tpu.memory_space<vmem>>, vector<1x14x14xf32>
    %398 = vector.shape_cast %397 : vector<1x14x14xf32> to vector<14x14xf32>
    %c3_114 = arith.constant 3 : index
    %c1_115 = arith.constant 1 : index
    %c0_116 = arith.constant 0 : index
    %399 = vector.load %arg5[%c3_114, %c1_115, %c0_116] : memref<4x16x16xf32, #tpu.memory_space<vmem>>, vector<1x14x14xf32>
    %400 = vector.shape_cast %399 : vector<1x14x14xf32> to vector<14x14xf32>
    %c3_117 = arith.constant 3 : index
    %c1_118 = arith.constant 1 : index
    %c1_119 = arith.constant 1 : index
    %401 = vector.load %arg5[%c3_117, %c1_118, %c1_119] : memref<4x16x16xf32, #tpu.memory_space<vmem>>, vector<1x14x14xf32>
    %402 = vector.shape_cast %401 : vector<1x14x14xf32> to vector<14x14xf32>
    %c3_120 = arith.constant 3 : index
    %c1_121 = arith.constant 1 : index
    %c2_122 = arith.constant 2 : index
    %403 = vector.load %arg5[%c3_120, %c1_121, %c2_122] : memref<4x16x16xf32, #tpu.memory_space<vmem>>, vector<1x14x14xf32>
    %404 = vector.shape_cast %403 : vector<1x14x14xf32> to vector<14x14xf32>
    %c3_123 = arith.constant 3 : index
    %c2_124 = arith.constant 2 : index
    %c0_125 = arith.constant 0 : index
    %405 = vector.load %arg5[%c3_123, %c2_124, %c0_125] : memref<4x16x16xf32, #tpu.memory_space<vmem>>, vector<1x14x14xf32>
    %406 = vector.shape_cast %405 : vector<1x14x14xf32> to vector<14x14xf32>
    %c3_126 = arith.constant 3 : index
    %c2_127 = arith.constant 2 : index
    %c1_128 = arith.constant 1 : index
    %407 = vector.load %arg5[%c3_126, %c2_127, %c1_128] : memref<4x16x16xf32, #tpu.memory_space<vmem>>, vector<1x14x14xf32>
    %408 = vector.shape_cast %407 : vector<1x14x14xf32> to vector<14x14xf32>
    %c3_129 = arith.constant 3 : index
    %c2_130 = arith.constant 2 : index
    %c2_131 = arith.constant 2 : index
    %409 = vector.load %arg5[%c3_129, %c2_130, %c2_131] : memref<4x16x16xf32, #tpu.memory_space<vmem>>, vector<1x14x14xf32>
    %410 = vector.shape_cast %409 : vector<1x14x14xf32> to vector<14x14xf32>
    %c27 = arith.constant 27 : index
    %411 = memref.load %arg2[%c27] : memref<108xf32, #tpu.memory_space<smem>>
    %412 = vector.broadcast %411 : f32 to vector<14x14xf32>
    %413 = arith.mulf %412, %394 : vector<14x14xf32>
    %414 = arith.addf %320, %413 : vector<14x14xf32>
    %c28 = arith.constant 28 : index
    %415 = memref.load %arg2[%c28] : memref<108xf32, #tpu.memory_space<smem>>
    %416 = vector.broadcast %415 : f32 to vector<14x14xf32>
    %417 = arith.mulf %416, %396 : vector<14x14xf32>
    %418 = arith.addf %414, %417 : vector<14x14xf32>
    %c29 = arith.constant 29 : index
    %419 = memref.load %arg2[%c29] : memref<108xf32, #tpu.memory_space<smem>>
    %420 = vector.broadcast %419 : f32 to vector<14x14xf32>
    %421 = arith.mulf %420, %398 : vector<14x14xf32>
    %422 = arith.addf %418, %421 : vector<14x14xf32>
    %c30 = arith.constant 30 : index
    %423 = memref.load %arg2[%c30] : memref<108xf32, #tpu.memory_space<smem>>
    %424 = vector.broadcast %423 : f32 to vector<14x14xf32>
    %425 = arith.mulf %424, %400 : vector<14x14xf32>
    %426 = arith.addf %422, %425 : vector<14x14xf32>
    %c31 = arith.constant 31 : index
    %427 = memref.load %arg2[%c31] : memref<108xf32, #tpu.memory_space<smem>>
    %428 = vector.broadcast %427 : f32 to vector<14x14xf32>
    %429 = arith.mulf %428, %402 : vector<14x14xf32>
    %430 = arith.addf %426, %429 : vector<14x14xf32>
    %c32 = arith.constant 32 : index
    %431 = memref.load %arg2[%c32] : memref<108xf32, #tpu.memory_space<smem>>
    %432 = vector.broadcast %431 : f32 to vector<14x14xf32>
    %433 = arith.mulf %432, %404 : vector<14x14xf32>
    %434 = arith.addf %430, %433 : vector<14x14xf32>
    %c33 = arith.constant 33 : index
    %435 = memref.load %arg2[%c33] : memref<108xf32, #tpu.memory_space<smem>>
    %436 = vector.broadcast %435 : f32 to vector<14x14xf32>
    %437 = arith.mulf %436, %406 : vector<14x14xf32>
    %438 = arith.addf %434, %437 : vector<14x14xf32>
    %c34 = arith.constant 34 : index
    %439 = memref.load %arg2[%c34] : memref<108xf32, #tpu.memory_space<smem>>
    %440 = vector.broadcast %439 : f32 to vector<14x14xf32>
    %441 = arith.mulf %440, %408 : vector<14x14xf32>
    %442 = arith.addf %438, %441 : vector<14x14xf32>
    %c35 = arith.constant 35 : index
    %443 = memref.load %arg2[%c35] : memref<108xf32, #tpu.memory_space<smem>>
    %444 = vector.broadcast %443 : f32 to vector<14x14xf32>
    %445 = arith.mulf %444, %410 : vector<14x14xf32>
    %446 = arith.addf %442, %445 : vector<14x14xf32>
    %c63 = arith.constant 63 : index
    %447 = memref.load %arg2[%c63] : memref<108xf32, #tpu.memory_space<smem>>
    %448 = vector.broadcast %447 : f32 to vector<14x14xf32>
    %449 = arith.mulf %448, %394 : vector<14x14xf32>
    %450 = arith.addf %356, %449 : vector<14x14xf32>
    %c64 = arith.constant 64 : index
    %451 = memref.load %arg2[%c64] : memref<108xf32, #tpu.memory_space<smem>>
    %452 = vector.broadcast %451 : f32 to vector<14x14xf32>
    %453 = arith.mulf %452, %396 : vector<14x14xf32>
    %454 = arith.addf %450, %453 : vector<14x14xf32>
    %c65 = arith.constant 65 : index
    %455 = memref.load %arg2[%c65] : memref<108xf32, #tpu.memory_space<smem>>
    %456 = vector.broadcast %455 : f32 to vector<14x14xf32>
    %457 = arith.mulf %456, %398 : vector<14x14xf32>
    %458 = arith.addf %454, %457 : vector<14x14xf32>
    %c66 = arith.constant 66 : index
    %459 = memref.load %arg2[%c66] : memref<108xf32, #tpu.memory_space<smem>>
    %460 = vector.broadcast %459 : f32 to vector<14x14xf32>
    %461 = arith.mulf %460, %400 : vector<14x14xf32>
    %462 = arith.addf %458, %461 : vector<14x14xf32>
    %c67 = arith.constant 67 : index
    %463 = memref.load %arg2[%c67] : memref<108xf32, #tpu.memory_space<smem>>
    %464 = vector.broadcast %463 : f32 to vector<14x14xf32>
    %465 = arith.mulf %464, %402 : vector<14x14xf32>
    %466 = arith.addf %462, %465 : vector<14x14xf32>
    %c68 = arith.constant 68 : index
    %467 = memref.load %arg2[%c68] : memref<108xf32, #tpu.memory_space<smem>>
    %468 = vector.broadcast %467 : f32 to vector<14x14xf32>
    %469 = arith.mulf %468, %404 : vector<14x14xf32>
    %470 = arith.addf %466, %469 : vector<14x14xf32>
    %c69 = arith.constant 69 : index
    %471 = memref.load %arg2[%c69] : memref<108xf32, #tpu.memory_space<smem>>
    %472 = vector.broadcast %471 : f32 to vector<14x14xf32>
    %473 = arith.mulf %472, %406 : vector<14x14xf32>
    %474 = arith.addf %470, %473 : vector<14x14xf32>
    %c70 = arith.constant 70 : index
    %475 = memref.load %arg2[%c70] : memref<108xf32, #tpu.memory_space<smem>>
    %476 = vector.broadcast %475 : f32 to vector<14x14xf32>
    %477 = arith.mulf %476, %408 : vector<14x14xf32>
    %478 = arith.addf %474, %477 : vector<14x14xf32>
    %c71 = arith.constant 71 : index
    %479 = memref.load %arg2[%c71] : memref<108xf32, #tpu.memory_space<smem>>
    %480 = vector.broadcast %479 : f32 to vector<14x14xf32>
    %481 = arith.mulf %480, %410 : vector<14x14xf32>
    %482 = arith.addf %478, %481 : vector<14x14xf32>
    %c99 = arith.constant 99 : index
    %483 = memref.load %arg2[%c99] : memref<108xf32, #tpu.memory_space<smem>>
    %484 = vector.broadcast %483 : f32 to vector<14x14xf32>
    %485 = arith.mulf %484, %394 : vector<14x14xf32>
    %486 = arith.addf %392, %485 : vector<14x14xf32>
    %c100 = arith.constant 100 : index
    %487 = memref.load %arg2[%c100] : memref<108xf32, #tpu.memory_space<smem>>
    %488 = vector.broadcast %487 : f32 to vector<14x14xf32>
    %489 = arith.mulf %488, %396 : vector<14x14xf32>
    %490 = arith.addf %486, %489 : vector<14x14xf32>
    %c101 = arith.constant 101 : index
    %491 = memref.load %arg2[%c101] : memref<108xf32, #tpu.memory_space<smem>>
    %492 = vector.broadcast %491 : f32 to vector<14x14xf32>
    %493 = arith.mulf %492, %398 : vector<14x14xf32>
    %494 = arith.addf %490, %493 : vector<14x14xf32>
    %c102 = arith.constant 102 : index
    %495 = memref.load %arg2[%c102] : memref<108xf32, #tpu.memory_space<smem>>
    %496 = vector.broadcast %495 : f32 to vector<14x14xf32>
    %497 = arith.mulf %496, %400 : vector<14x14xf32>
    %498 = arith.addf %494, %497 : vector<14x14xf32>
    %c103 = arith.constant 103 : index
    %499 = memref.load %arg2[%c103] : memref<108xf32, #tpu.memory_space<smem>>
    %500 = vector.broadcast %499 : f32 to vector<14x14xf32>
    %501 = arith.mulf %500, %402 : vector<14x14xf32>
    %502 = arith.addf %498, %501 : vector<14x14xf32>
    %c104 = arith.constant 104 : index
    %503 = memref.load %arg2[%c104] : memref<108xf32, #tpu.memory_space<smem>>
    %504 = vector.broadcast %503 : f32 to vector<14x14xf32>
    %505 = arith.mulf %504, %404 : vector<14x14xf32>
    %506 = arith.addf %502, %505 : vector<14x14xf32>
    %c105 = arith.constant 105 : index
    %507 = memref.load %arg2[%c105] : memref<108xf32, #tpu.memory_space<smem>>
    %508 = vector.broadcast %507 : f32 to vector<14x14xf32>
    %509 = arith.mulf %508, %406 : vector<14x14xf32>
    %510 = arith.addf %506, %509 : vector<14x14xf32>
    %c106 = arith.constant 106 : index
    %511 = memref.load %arg2[%c106] : memref<108xf32, #tpu.memory_space<smem>>
    %512 = vector.broadcast %511 : f32 to vector<14x14xf32>
    %513 = arith.mulf %512, %408 : vector<14x14xf32>
    %514 = arith.addf %510, %513 : vector<14x14xf32>
    %c107 = arith.constant 107 : index
    %515 = memref.load %arg2[%c107] : memref<108xf32, #tpu.memory_space<smem>>
    %516 = vector.broadcast %515 : f32 to vector<14x14xf32>
    %517 = arith.mulf %516, %410 : vector<14x14xf32>
    %518 = arith.addf %514, %517 : vector<14x14xf32>
    %c0_132 = arith.constant 0 : index
    %519 = memref.load %arg3[%c0_132] : memref<3xf32, #tpu.memory_space<smem>>
    %520 = vector.broadcast %519 : f32 to vector<14x14xf32>
    %521 = arith.addf %446, %520 : vector<14x14xf32>
    %522 = arith.negf %521 : vector<14x14xf32>
    %523 = math.exp %522 : vector<14x14xf32>
    %cst_133 = arith.constant 1.000000e+00 : f32
    %524 = vector.broadcast %cst_133 : f32 to vector<14x14xf32>
    %525 = arith.addf %524, %523 : vector<14x14xf32>
    %526 = arith.divf %524, %525 : vector<14x14xf32>
    %527 = arith.index_cast %c0_i32 : i32 to index
    %c0_134 = arith.constant 0 : index
    %c0_135 = arith.constant 0 : index
    %c0_136 = arith.constant 0 : index
    %528 = vector.load %arg4[%527, %c0_134, %c0_135, %c0_136] : memref<1x3x14x14xf32, #tpu.memory_space<vmem>>, vector<1x1x14x14xf32>
    %529 = vector.shape_cast %528 : vector<1x1x14x14xf32> to vector<14x14xf32>
    %530 = vector.shape_cast %526 : vector<14x14xf32> to vector<1x1x14x14xf32>
    tpu.vector_store %arg4[%527, %c0_134, %c0_135, %c0_136], %530 {strides = array<i32>} : memref<1x3x14x14xf32, #tpu.memory_space<vmem>>, vector<1x1x14x14xf32>,
    %c1_137 = arith.constant 1 : index
    %531 = memref.load %arg3[%c1_137] : memref<3xf32, #tpu.memory_space<smem>>
    %532 = vector.broadcast %531 : f32 to vector<14x14xf32>
    %533 = arith.addf %482, %532 : vector<14x14xf32>
    %534 = arith.negf %533 : vector<14x14xf32>
    %535 = math.exp %534 : vector<14x14xf32>
    %cst_138 = arith.constant 1.000000e+00 : f32
    %536 = vector.broadcast %cst_138 : f32 to vector<14x14xf32>
    %537 = arith.addf %536, %535 : vector<14x14xf32>
    %538 = arith.divf %536, %537 : vector<14x14xf32>
    %539 = arith.index_cast %c0_i32 : i32 to index
    %c1_139 = arith.constant 1 : index
    %c0_140 = arith.constant 0 : index
    %c0_141 = arith.constant 0 : index
    %540 = vector.load %arg4[%539, %c1_139, %c0_140, %c0_141] : memref<1x3x14x14xf32, #tpu.memory_space<vmem>>, vector<1x1x14x14xf32>
    %541 = vector.shape_cast %540 : vector<1x1x14x14xf32> to vector<14x14xf32>
    %542 = vector.shape_cast %538 : vector<14x14xf32> to vector<1x1x14x14xf32>
    tpu.vector_store %arg4[%539, %c1_139, %c0_140, %c0_141], %542 {strides = array<i32>} : memref<1x3x14x14xf32, #tpu.memory_space<vmem>>, vector<1x1x14x14xf32>,
    %c2_142 = arith.constant 2 : index
    %543 = memref.load %arg3[%c2_142] : memref<3xf32, #tpu.memory_space<smem>>
    %544 = vector.broadcast %543 : f32 to vector<14x14xf32>
    %545 = arith.addf %518, %544 : vector<14x14xf32>
    %546 = arith.negf %545 : vector<14x14xf32>
    %547 = math.exp %546 : vector<14x14xf32>
    %cst_143 = arith.constant 1.000000e+00 : f32
    %548 = vector.broadcast %cst_143 : f32 to vector<14x14xf32>
    %549 = arith.addf %548, %547 : vector<14x14xf32>
    %550 = arith.divf %548, %549 : vector<14x14xf32>
    %551 = arith.index_cast %c0_i32 : i32 to index
    %c2_144 = arith.constant 2 : index
    %c0_145 = arith.constant 0 : index
    %c0_146 = arith.constant 0 : index
    %552 = vector.load %arg4[%551, %c2_144, %c0_145, %c0_146] : memref<1x3x14x14xf32, #tpu.memory_space<vmem>>, vector<1x1x14x14xf32>
    %553 = vector.shape_cast %552 : vector<1x1x14x14xf32> to vector<14x14xf32>
    %554 = vector.shape_cast %550 : vector<14x14xf32> to vector<1x1x14x14xf32>
    tpu.vector_store %arg4[%551, %c2_144, %c0_145, %c0_146], %554 {strides = array<i32>} : memref<1x3x14x14xf32, #tpu.memory_space<vmem>>, vector<1x1x14x14xf32>,
    %c1_i32 = arith.constant 1 : i32
    return
  }
  func.func @transform_0(%arg0: i32) -> (i32, i32, i32, i32) {
    %c0_i32 = arith.constant 0 : i32
    %c0_i32_0 = arith.constant 0 : i32
    %c0_i32_1 = arith.constant 0 : i32
    %c0_i32_2 = arith.constant 0 : i32
    return %arg0, %c0_i32, %c0_i32_0, %c0_i32_1 : i32, i32, i32, i32
  }
  func.func @transform_1(%arg0: i32) -> i32 {
    %c0_i32 = arith.constant 0 : i32
    %c0_i32_0 = arith.constant 0 : i32
    return %c0_i32 : i32
  }
  func.func @transform_2(%arg0: i32) -> i32 {
    %c0_i32 = arith.constant 0 : i32
    %c0_i32_0 = arith.constant 0 : i32
    return %c0_i32 : i32
  }
  func.func @transform_3(%arg0: i32) -> (i32, i32, i32, i32) {
    %c0_i32 = arith.constant 0 : i32
    %c0_i32_0 = arith.constant 0 : i32
    %c0_i32_1 = arith.constant 0 : i32
    %c0_i32_2 = arith.constant 0 : i32
    return %arg0, %c0_i32, %c0_i32_0, %c0_i32_1 : i32, i32, i32, i32
  }
}

</mosaic_0001>

<bundles_post_ra>
// kernel: model_forward.1
= control target key start
LH: loop header
LB: loop body
LE: loop exit
PB: predicated region body
PF: predicated region fallthrough
CT: control target
= control target key end

     0   :  { %8 = vsyncpa [#allocation4], 0  ;;  %s2372_s0 = inlined_call_operand.vmem [shape: f32[1,4,12,12], index: 0, kind: input, shape index: {}]   ;;  %s2373_s1 = inlined_call_operand.vmem [shape: f32[108], index: 1, kind: input, shape index: {}]   ;;  %s2374_s2 = inlined_call_operand.vmem [shape: f32[3], index: 2, kind: input, shape index: {}]   ;;  %s2375_s3 = inlined_call_operand.vmem [shape: f32[1,3,14,14], index: 3, kind: output, shape index: {}]  }
   0x1   :  { %s18_s14 = sshll.u32 %s2373_s1, 4  ;;  %s19_s14 = int_to_ptr.vmem [resolvable:$true] %s18_s14 }
   0x2   :  { %9 = vsyncpa [#allocation6], 0  ;;  %s28_s17 = sshll.u32 %s2374_s2, 4  ;;  %s1582_s18 = scalar_lea.vmem %s19_s14, 16  ;;  %s29_s17 = int_to_ptr.vmem [resolvable:$true] %s28_s17 }
   0x3   :  { %p1583_p0 = scmp.ne.s32.totalorder %s19_s14, %s1582_s18  ;;  %p1587_p1 = scmp.lt.s32.totalorder %s19_s14, %s19_s14 }
   0x4   :  { %p1588_p2 = scmp.lt.s32.totalorder %s1582_s18, %s1582_s18 }
   0x6   :  { %p1589_p3 = por %p1588_p2, %p1587_p1 }
   0x8   :  { %p1590_p4 = pnand %p1589_p3, %p1583_p0 }
   0xa   :  { %1593 = shalt.err (!%p1590_p4)
}
   0xb   :  { %s1610_s19 = smov [#allocation3]   ;;  %s1594_s20 = scalar_lea.vmem %s29_s17, 16 }
   0xc   :  { %21 = dma.vmem_to_smem %s19_s14, 16, %s1610_s19, [#allocation4]  }
   0xd   :  { %p1595_p5 = scmp.ne.s32.totalorder %s29_s17, %s1594_s20  ;;  %p1599_p6 = scmp.lt.s32.totalorder %s29_s17, %s29_s17 }
   0xe   :  { %p1600_p7 = scmp.lt.s32.totalorder %s1594_s20, %s1594_s20 }
  0x10   :  { %p1601_p8 = por %p1600_p7, %p1599_p6 }
  0x12   :  { %p1602_p9 = pnand %p1601_p8, %p1595_p5 }
  0x14   :  { %1605 = shalt.err (!%p1602_p9)
}
  0x15   :  { %s1611_s1 = smov [#allocation5]  }
  0x16   :  { %31 = dma.vmem_to_smem %s29_s17, 16, %s1611_s1, [#allocation6]  }
  0x17   :  { %1606 = dma.done.wait [#allocation4], 16  }
  0x18   :  { %1607 = vsyncadd [#allocation4], 4294967280 }
  0x19   :  { %1608 = dma.done.wait [#allocation6], 16  }
  0x1a   :  { %1609 = vsyncadd [#allocation6], 4294967280 }
  0x1b   :  { %38 = sfence }
  0x1c   :  { %v68_v0 = vld [vmem:[%s2372_s0] sm:$0xff]  ;;  %v70_v1 = vld [vmem:[%s2372_s0 + $0x10] sm:$0xff]  ;;  %s1612_s24 = smov 2   ;;  %vm48_vm0 = vcmask 15360   ;;  %vm58_vm1 = vcmask 130160   ;;  %v1613_v4 = vmov 0.0  }
  0x1d   :  { %84 = vrot.lane.b32.xlu0 %v68_v0, %s1612_s24  ;;  %88 = vrot.lane.b32.xlu1 %v70_v1, %s1612_s24  ;;  %v69_v2 = vld [vmem:[%s2372_s0 + $0x8] sm:$0xf]  ;;  %v71_v3 = vld [vmem:[%s2372_s0 + $0x18] sm:$0xf]  ;;  %49 = vst.msk [vmem:[#allocation2 + $0x2] sm:$0xff] %vm48_vm0, %v1613_v4  ;;  %52 = vst.msk [vmem:[#allocation2 + $0x12] sm:$0xff] %vm48_vm0, %v1613_v4 }
  0x1e   :  { %54 = vst.msk [vmem:[#allocation2 + $0x22] sm:$0xff] %vm48_vm0, %v1613_v4  ;;  %56 = vst.msk [vmem:[#allocation2 + $0x32] sm:$0xff] %vm48_vm0, %v1613_v4  ;;  %vm50_vm2 = vcmask 11264   ;;  %vm60_vm3 = vcmask 126064   ;;  %vm39_vm4 = vcmask 123904   ;;  %v72_v5 = vld [vmem:[%s2372_s0 + $0x20] sm:$0xff] }
  0x1f   :  { %59 = vst.msk [vmem:[#allocation2 + $0x2] sm:$0xff] %vm58_vm1, %v1613_v4  ;;  %62 = vst.msk [vmem:[#allocation2 + $0x12] sm:$0xff] %vm58_vm1, %v1613_v4  ;;  %v73_v6 = vld [vmem:[%s2372_s0 + $0x28] sm:$0xf]  ;;  %v74_v7 = vld [vmem:[%s2372_s0 + $0x30] sm:$0xff]  ;;  %vm108_vm5 = vcmask 113680  }
  0x20   :  { %64 = vst.msk [vmem:[#allocation2 + $0x22] sm:$0xff] %vm58_vm1, %v1613_v4  ;;  %66 = vst.msk [vmem:[#allocation2 + $0x32] sm:$0xff] %vm58_vm1, %v1613_v4  ;;  %v75_v8 = vld [vmem:[%s2372_s0 + $0x38] sm:$0xf]  ;;  %s1433_s10 = sld [smem:[#allocation3 + $0x1]]  ;;  %vm110_vm6 = vcmask 109584  }
  0x21   :  { %51 = vst.msk [vmem:[#allocation2 + $0xa] sm:$0xf] %vm50_vm2, %v1613_v4  ;;  %53 = vst.msk [vmem:[#allocation2 + $0x1a] sm:$0xf] %vm50_vm2, %v1613_v4  ;;  %86 = vrot.lane.b32.xlu0 %v69_v2, %s1612_s24  ;;  %90 = vrot.lane.b32.xlu1 %v71_v3, %s1612_s24  ;;  %s1676_s11 = sld [smem:[#allocation3 + $0x2]]  ;;  %s1680_s0 = sld [smem:[#allocation3 + $0x4]] }
  0x22   :  { %55 = vst.msk [vmem:[#allocation2 + $0x2a] sm:$0xf] %vm50_vm2, %v1613_v4  ;;  %57 = vst.msk [vmem:[#allocation2 + $0x3a] sm:$0xf] %vm50_vm2, %v1613_v4  ;;  %s1688_s12 = sld [smem:[#allocation3 + $0x5]]  ;;  %s1614_s13 = smov 127  }
  0x23   :  { %61 = vst.msk [vmem:[#allocation2 + $0xa] sm:$0xf] %vm60_vm3, %v1613_v4  ;;  %63 = vst.msk [vmem:[#allocation2 + $0x1a] sm:$0xf] %vm60_vm3, %v1613_v4  ;;  %s1439_s14 = sld [smem:[#allocation3 + $0x7]]  ;;  %s1615_s15 = smov 126  }
  0x24   :  { %65 = vst.msk [vmem:[#allocation2 + $0x2a] sm:$0xf] %vm60_vm3, %v1613_v4  ;;  %67 = vst.msk [vmem:[#allocation2 + $0x3a] sm:$0xf] %vm60_vm3, %v1613_v4  ;;  %s1440_s16 = sld [smem:[#allocation3 + $0x8]]  ;;  %s1442_s17 = sld [smem:[#allocation3 + $0x25]] }
  0x25   :  { %40 = vst.msk [vmem:[#allocation2] sm:$0x3] %vm39_vm4, %v1613_v4  ;;  %41 = vst.msk [vmem:[#allocation2 + $0x10] sm:$0x3] %vm39_vm4, %v1613_v4  ;;  %92 = vrot.lane.b32.xlu0 %v72_v5, %s1612_s24  ;;  %94 = vrot.lane.b32.xlu1 %v73_v6, %s1612_s24  ;;  %s1443_s18 = sld [smem:[#allocation3 + $0x26]]  ;;  %s1445_s19 = sld [smem:[#allocation3 + $0x28]] }
  0x26   :  { %42 = vst.msk [vmem:[#allocation2 + $0x20] sm:$0x3] %vm39_vm4, %v1613_v4  ;;  %43 = vst.msk [vmem:[#allocation2 + $0x30] sm:$0x3] %vm39_vm4, %v1613_v4  ;;  %v131_v13 = vstv %s1433_s10  ;;  %s1446_s20 = sld [smem:[#allocation3 + $0x29]]  ;;  %s1448_s1 = sld [smem:[#allocation3 + $0x2b]] }
  0x27   :  { %44 = vst.msk [vmem:[#allocation2 + $0xe] sm:$0x3] %vm39_vm4, %v1613_v4  ;;  %45 = vst.msk [vmem:[#allocation2 + $0x1e] sm:$0x3] %vm39_vm4, %v1613_v4  ;;  %v145_v18 = vstv %s1676_s11  ;;  %v165_v25 = vstv %s1680_s0  ;;  %s1449_s2 = sld [smem:[#allocation3 + $0x2c]]  ;;  %s1451_s21 = sld [smem:[#allocation3 + $0x49]] }
  0x28   :  { %46 = vst.msk [vmem:[#allocation2 + $0x2e] sm:$0x3] %vm39_vm4, %v1613_v4  ;;  %47 = vst.msk [vmem:[#allocation2 + $0x3e] sm:$0x3] %vm39_vm4, %v1613_v4  ;;  %v179_v29 = vstv %s1688_s12  ;;  %s1452_s22 = sld [smem:[#allocation3 + $0x4a]]  ;;  %s1454_s23 = sld [smem:[#allocation3 + $0x4c]] }
  0x29   :  { %96 = vrot.lane.b32.xlu0 %v74_v7, %s1612_s24  ;;  %98 = vrot.lane.b32.xlu1 %v75_v8, %s1612_s24  ;;  %v199_v33 = vstv %s1439_s14  ;;  %s1455_s24 = sld [smem:[#allocation3 + $0x4d]]  ;;  %s1457_s25 = sld [smem:[#allocation3 + $0x4f]]  ;;  %vm1385_vm7 = vcmask 113664   ;;  %vm1387_vm8 = vcmask 111616  }
  0x2a   :  { %v213_v37 = vstv %s1440_s16  ;;  %v233_v40 = vstv %s1442_s17  ;;  %s1458_s26 = sld [smem:[#allocation3 + $0x50]]  ;;  %s1460_s27 = sld [smem:[#allocation3 + $0xa]] }
  0x2b   :  { %v247_v43 = vstv %s1443_s18  ;;  %v267_v46 = vstv %s1445_s19  ;;  %s1461_s28 = sld [smem:[#allocation3 + $0xb]]  ;;  %s1463_s29 = sld [smem:[#allocation3 + $0xd]] }
  0x2c   :  { %v281_v49 = vstv %s1446_s20  ;;  %v301_v52 = vstv %s1448_s1  ;;  %s1464_s30 = sld [smem:[#allocation3 + $0xe]]  ;;  %s1466_s4 = sld [smem:[#allocation3 + $0x10]] }
  0x2d   :  { %v315_v55 = vstv %s1449_s2  ;;  %v335_v58 = vstv %s1451_s21  ;;  %s1467_s5 = sld [smem:[#allocation3 + $0x11]]  ;;  %s1469_s6 = sld [smem:[#allocation3 + $0x2e]] }
  0x2e   :  { %v349_v61 = vstv %s1452_s22  ;;  %v369_v0 = vstv %s1454_s23  ;;  %s1470_s7 = sld [smem:[#allocation3 + $0x2f]]  ;;  %s1472_s8 = sld [smem:[#allocation3 + $0x31]] }
  0x2f   :  { %v383_v3 = vstv %s1455_s24  ;;  %v403_v6 = vstv %s1457_s25  ;;  %s1473_s9 = sld [smem:[#allocation3 + $0x32]]  ;;  %s1475_s10 = sld [smem:[#allocation3 + $0x34]] }
  0x30   :  { %s1819_s11 = sld [smem:[#allocation3 + $0x35]]  ;;  %s124_s0 = sld [smem:[#allocation3]] }
  0x31   :  { %s1825_s12 = sld [smem:[#allocation3 + $0x52]]  ;;  %s1829_s14 = sld [smem:[#allocation3 + $0x3]] }
  0x32   :  { %s1834_s16 = sld [smem:[#allocation3 + $0x53]]  ;;  %s1842_s17 = sld [smem:[#allocation3 + $0x55]] }
  0x33   :  { %s1847_s18 = sld [smem:[#allocation3 + $0x6]]  ;;  %s1862_s20 = sld [smem:[#allocation3 + $0x58]] }
  0x34   :  { %s1854_s19 = sld [smem:[#allocation3 + $0x56]]  ;;  %s1867_s1 = sld [smem:[#allocation3 + $0x9]] }
  0x35   :  { %s1873_s2 = sld [smem:[#allocation3 + $0x59]]  ;;  %s1877_s21 = sld [smem:[#allocation3 + $0x24]] }
  0x36   :  { %s1883_s22 = sld [smem:[#allocation3 + $0x13]]  ;;  %s1887_s23 = sld [smem:[#allocation3 + $0x27]] }
  0x37   :  { %s1893_s24 = sld [smem:[#allocation3 + $0x14]]  ;;  %s1907_s25 = sld [smem:[#allocation3 + $0x16]] }
  0x8f   :  { %v85_v9 = vpop.permute.xlu0 %84  ;;  %v89_v10 = vpop.permute.xlu1 %88 }
  0x90   :  { %109 = vst.msk [vmem:[#allocation2 + $0x2] sm:$0xff] %vm108_vm5, %v85_v9  ;;  %112 = vst.msk [vmem:[#allocation2 + $0x12] sm:$0xff] %vm108_vm5, %v89_v10  ;;  %v417_v9 = vstv %s1458_s26  ;;  %s1913_s26 = sld [smem:[#allocation3 + $0x2a]] }
  0x93   :  { %v87_v11 = vpop.permute.xlu0 %86  ;;  %v91_v12 = vpop.permute.xlu1 %90 }
  0x94   :  { %111 = vst.msk [vmem:[#allocation2 + $0xa] sm:$0xf] %vm110_vm6, %v87_v11  ;;  %113 = vst.msk [vmem:[#allocation2 + $0x1a] sm:$0xf] %vm110_vm6, %v91_v12  ;;  %v444_v11 = vstv %s1460_s27  ;;  %s1924_s27 = sld [smem:[#allocation3 + $0x17]] }
  0x97   :  { %v1682_v14 = vld [vmem:[#allocation2] sm:$0xff]  ;;  %v93_v15 = vpop.permute.xlu0 %92  ;;  %v95_v16 = vpop.permute.xlu1 %94  ;;  %v1769_v10 = vld [vmem:[#allocation2 + $0x10] sm:$0xff] }
  0x98   :  { %v132_v17 = vmul.f32 %v131_v13, %v1682_v14  ;;  %114 = vst.msk [vmem:[#allocation2 + $0x22] sm:$0xff] %vm108_vm5, %v93_v15  ;;  %v146_v23 = vmul.f32 %v145_v18, %v1682_v14  ;;  %v1697_v24 = vld [vmem:[#allocation2 + $0x1] sm:$0xff]  ;;  %v234_v42 = vmul.f32 %v233_v40, %v1682_v14  ;;  %v248_v45 = vmul.f32 %v247_v43, %v1682_v14 }
  0x99   :  { %115 = vst.msk [vmem:[#allocation2 + $0x2a] sm:$0xf] %vm110_vm6, %v95_v16  ;;  %v166_v27 = vmul.f32 %v165_v25, %v1697_v24  ;;  %v180_v31 = vmul.f32 %v179_v29, %v1697_v24  ;;  %v1711_v32 = vld [vmem:[#allocation2 + $0x2] sm:$0xff]  ;;  %v268_v48 = vmul.f32 %v267_v46, %v1697_v24  ;;  %v282_v51 = vmul.f32 %v281_v49, %v1697_v24 }
  0x9a   :  { %136 = vrot.lane.b32.xlu0 %v132_v17, %s1614_s13  ;;  %v200_v35 = vmul.f32 %v199_v33, %v1711_v32  ;;  %v214_v39 = vmul.f32 %v213_v37, %v1711_v32  ;;  %v302_v54 = vmul.f32 %v301_v52, %v1711_v32  ;;  %v316_v57 = vmul.f32 %v315_v55, %v1711_v32 }
  0x9b   :  { %v1691_v19 = vld [vmem:[#allocation2 + $0x8] sm:$0x3f]  ;;  %v97_v20 = vpop.permute.xlu0 %96  ;;  %v99_v21 = vpop.permute.xlu1 %98  ;;  %v336_v60 = vmul.f32 %v335_v58, %v1682_v14  ;;  %v350_v63 = vmul.f32 %v349_v61, %v1682_v14  ;;  %v370_v2 = vmul.f32 %v369_v0, %v1697_v24  ;;  %v384_v5 = vmul.f32 %v383_v3, %v1697_v24  ;;  %v1777_v17 = vld [vmem:[#allocation2 + $0x18] sm:$0x3f] }
  0x9c   :  { %v133_v22 = vmul.f32 %v131_v13, %v1691_v19  ;;  %116 = vst.msk [vmem:[#allocation2 + $0x32] sm:$0xff] %vm108_vm5, %v97_v20  ;;  %v147_v26 = vmul.f32 %v145_v18, %v1691_v19  ;;  %v1704_v28 = vld [vmem:[#allocation2 + $0x9] sm:$0x3f]  ;;  %v235_v44 = vmul.f32 %v233_v40, %v1691_v19  ;;  %v249_v47 = vmul.f32 %v247_v43, %v1691_v19 }
  0x9d   :  { %117 = vst.msk [vmem:[#allocation2 + $0x3a] sm:$0xf] %vm110_vm6, %v99_v21  ;;  %v167_v30 = vmul.f32 %v165_v25, %v1704_v28  ;;  %v181_v34 = vmul.f32 %v179_v29, %v1704_v28  ;;  %v1717_v36 = vld [vmem:[#allocation2 + $0xa] sm:$0x3f]  ;;  %v269_v50 = vmul.f32 %v267_v46, %v1704_v28  ;;  %v283_v53 = vmul.f32 %v281_v49, %v1704_v28 }
  0x9e   :  { %138 = vrot.lane.b32.xlu1 %v133_v22, %s1614_s13  ;;  %150 = vrot.lane.b32.xlu0 %v146_v23, %s1615_s15  ;;  %v201_v38 = vmul.f32 %v199_v33, %v1717_v36  ;;  %v215_v41 = vmul.f32 %v213_v37, %v1717_v36  ;;  %v303_v56 = vmul.f32 %v301_v52, %v1717_v36  ;;  %v458_v18 = vstv %s1461_s28  ;;  %v1783_v22 = vld [vmem:[#allocation2 + $0x11] sm:$0xff]  ;;  %s1934_s28 = sld [smem:[#allocation3 + $0x19]] }
  0x9f   :  { %v317_v59 = vmul.f32 %v315_v55, %v1717_v36  ;;  %v337_v62 = vmul.f32 %v335_v58, %v1691_v19  ;;  %v351_v1 = vmul.f32 %v349_v61, %v1691_v19  ;;  %v371_v4 = vmul.f32 %v369_v0, %v1704_v28  ;;  %v1795_v33 = vld [vmem:[#allocation2 + $0x12] sm:$0xff] }
  0xa0   :  { %v385_v7 = vmul.f32 %v383_v3, %v1704_v28  ;;  %v404_v8 = vmul.f32 %v403_v6, %v1711_v32  ;;  %v405_v12 = vmul.f32 %v403_v6, %v1717_v36  ;;  %v418_v13 = vmul.f32 %v417_v9, %v1711_v32 }
  0xa1   :  { %v445_v15 = vmul.f32 %v444_v11, %v1769_v10  ;;  %v419_v16 = vmul.f32 %v417_v9, %v1717_v36  ;;  %v446_v20 = vmul.f32 %v444_v11, %v1777_v17  ;;  %v459_v21 = vmul.f32 %v458_v18, %v1769_v10 }
  0xa2   :  { %152 = vrot.lane.b32.xlu1 %v147_v26, %s1615_s15  ;;  %170 = vrot.lane.b32.xlu0 %v166_v27, %s1614_s13  ;;  %v478_v23 = vstv %s1463_s29  ;;  %v460_v25 = vmul.f32 %v458_v18, %v1777_v17  ;;  %v1789_v27 = vld [vmem:[#allocation2 + $0x19] sm:$0x3f]  ;;  %v492_v29 = vstv %s1464_s30  ;;  %s1939_s29 = sld [smem:[#allocation3 + $0x2d]]  ;;  %s1947_s30 = sld [smem:[#allocation3 + $0x1a]] }
  0xa3   :  { %v479_v26 = vmul.f32 %v478_v23, %v1783_v22  ;;  %v125_v58 = vstv %s124_s0  ;;  %v159_v0 = vstv %s1829_s14  ;;  %v662_v9 = vstv %s1834_s16  ;;  %s2011_s0 = sld [smem:[#allocation3 + $0x51]]  ;;  %s2025_s14 = sld [smem:[#allocation3 + $0x3b]] }
  0xa4   :  { %v127_v6 = vmul.f32 %v125_v58, %v1691_v19  ;;  %v663_v18 = vmul.f32 %v662_v9, %v1769_v10  ;;  %s2029_s16 = sld [smem:[#allocation3 + $0xc]] }
  0xa6   :  { %172 = vrot.lane.b32.xlu1 %v167_v30, %s1614_s13  ;;  %184 = vrot.lane.b32.xlu0 %v180_v31, %s1615_s15  ;;  %v480_v30 = vmul.f32 %v478_v23, %v1789_v27  ;;  %v493_v31 = vmul.f32 %v492_v29, %v1783_v22  ;;  %v682_v23 = vstv %s1842_s17  ;;  %s2035_s17 = sld [smem:[#allocation3 + $0x5f]] }
  0xaa   :  { %186 = vrot.lane.b32.xlu1 %v181_v34, %s1615_s15  ;;  %204 = vrot.lane.b32.xlu0 %v200_v35, %s1614_s13  ;;  %v512_v34 = vstv %s1466_s4  ;;  %v494_v35 = vmul.f32 %v492_v29, %v1789_v27  ;;  %s1951_s4 = sld [smem:[#allocation3 + $0x48]] }
  0xab   :  { %v513_v37 = vmul.f32 %v512_v34, %v1795_v33 }
  0xae   :  { %206 = vrot.lane.b32.xlu1 %v201_v38, %s1614_s13  ;;  %218 = vrot.lane.b32.xlu0 %v214_v39, %s1615_s15  ;;  %v1801_v38 = vld [vmem:[#allocation2 + $0x1a] sm:$0x3f]  ;;  %v526_v39 = vstv %s1467_s5  ;;  %s1959_s5 = sld [smem:[#allocation3 + $0x37]] }
  0xaf   :  { %v514_v40 = vmul.f32 %v512_v34, %v1801_v38  ;;  %v528_v43 = vmul.f32 %v526_v39, %v1801_v38  ;;  %v664_v34 = vmul.f32 %v662_v9, %v1777_v17 }
  0xb2   :  { %220 = vrot.lane.b32.xlu1 %v215_v41, %s1615_s15  ;;  %238 = vrot.lane.b32.xlu0 %v234_v42, %s1614_s13  ;;  %v527_v41 = vmul.f32 %v526_v39, %v1795_v33  ;;  %v546_v42 = vstv %s1469_s6  ;;  %s1963_s6 = sld [smem:[#allocation3 + $0x4b]] }
  0xb3   :  { %v548_v46 = vmul.f32 %v546_v42, %v1777_v17 }
  0xb6   :  { %240 = vrot.lane.b32.xlu1 %v235_v44, %s1614_s13  ;;  %252 = vrot.lane.b32.xlu0 %v248_v45, %s1615_s15  ;;  %v547_v44 = vmul.f32 %v546_v42, %v1769_v10  ;;  %v560_v45 = vstv %s1470_s7  ;;  %s1971_s7 = sld [smem:[#allocation3 + $0x5b]] }
  0xb7   :  { %v562_v49 = vmul.f32 %v560_v45, %v1777_v17 }
  0xba   :  { %254 = vrot.lane.b32.xlu1 %v249_v47, %s1615_s15  ;;  %272 = vrot.lane.b32.xlu0 %v268_v48, %s1614_s13  ;;  %v561_v47 = vmul.f32 %v560_v45, %v1769_v10  ;;  %v580_v48 = vstv %s1472_s8  ;;  %v684_v45 = vmul.f32 %v682_v23, %v1789_v27  ;;  %s1983_s8 = sld [smem:[#allocation3 + $0x38]] }
  0xbb   :  { %v582_v52 = vmul.f32 %v580_v48, %v1789_v27 }
  0xbe   :  { %274 = vrot.lane.b32.xlu1 %v269_v50, %s1614_s13  ;;  %286 = vrot.lane.b32.xlu0 %v282_v51, %s1615_s15  ;;  %v581_v50 = vmul.f32 %v580_v48, %v1783_v22  ;;  %v594_v51 = vstv %s1473_s9  ;;  %s1989_s9 = sld [smem:[#allocation3 + $0x4e]] }
  0xbf   :  { %v596_v55 = vmul.f32 %v594_v51, %v1789_v27 }
  0xc2   :  { %288 = vrot.lane.b32.xlu1 %v283_v53, %s1615_s15  ;;  %306 = vrot.lane.b32.xlu0 %v302_v54, %s1614_s13  ;;  %v595_v53 = vmul.f32 %v594_v51, %v1783_v22  ;;  %v614_v54 = vstv %s1475_s10  ;;  %s1998_s10 = sld [smem:[#allocation3 + $0x5c]] }
  0xc6   :  { %308 = vrot.lane.b32.xlu1 %v303_v56, %s1614_s13  ;;  %320 = vrot.lane.b32.xlu0 %v316_v57, %s1615_s15  ;;  %v615_v56 = vmul.f32 %v614_v54, %v1795_v33  ;;  %v628_v57 = vstv %s1819_s11  ;;  %s2006_s11 = sld [smem:[#allocation3 + $0x3a]] }
  0xc7   :  { %v629_v61 = vmul.f32 %v628_v57, %v1795_v33 }
  0xca   :  { %322 = vrot.lane.b32.xlu1 %v317_v59, %s1615_s15  ;;  %340 = vrot.lane.b32.xlu0 %v336_v60, %s1614_s13  ;;  %v616_v60 = vmul.f32 %v614_v54, %v1801_v38 }
  0xce   :  { %342 = vrot.lane.b32.xlu1 %v337_v62, %s1614_s13  ;;  %354 = vrot.lane.b32.xlu0 %v350_v63, %s1615_s15  ;;  %v126_v62 = vmul.f32 %v125_v58, %v1682_v14  ;;  %v648_v63 = vstv %s1825_s12  ;;  %v730_v58 = vstv %s1873_s2  ;;  %s2017_s12 = sld [smem:[#allocation3 + $0x5e]]  ;;  %s2074_s2 = sld [smem:[#allocation3 + $0x12]] }
  0xd2   :  { %356 = vrot.lane.b32.xlu1 %v351_v1, %s1615_s15  ;;  %374 = vrot.lane.b32.xlu0 %v370_v2, %s1614_s13 }
  0xd6   :  { %376 = vrot.lane.b32.xlu1 %v371_v4, %s1614_s13  ;;  %388 = vrot.lane.b32.xlu0 %v384_v5, %s1615_s15  ;;  %v630_v4 = vmul.f32 %v628_v57, %v1801_v38  ;;  %v649_v5 = vmul.f32 %v648_v63, %v1769_v10 }
  0xda   :  { %390 = vrot.lane.b32.xlu1 %v385_v7, %s1615_s15  ;;  %408 = vrot.lane.b32.xlu0 %v404_v8, %s1614_s13  ;;  %v160_v8 = vmul.f32 %v159_v0, %v1697_v24 }
  0xde   :  { %410 = vrot.lane.b32.xlu1 %v405_v12, %s1614_s13  ;;  %422 = vrot.lane.b32.xlu0 %v418_v13, %s1615_s15 }
  0xe2   :  { %424 = vrot.lane.b32.xlu1 %v419_v16, %s1615_s15  ;;  %449 = vrot.lane.b32.xlu0 %v445_v15, %s1614_s13  ;;  %v650_v16 = vmul.f32 %v648_v63, %v1777_v17 }
  0xe6   :  { %451 = vrot.lane.b32.xlu1 %v446_v20, %s1614_s13  ;;  %463 = vrot.lane.b32.xlu0 %v459_v21, %s1615_s15  ;;  %v161_v21 = vmul.f32 %v159_v0, %v1704_v28 }
  0xea   :  { %465 = vrot.lane.b32.xlu1 %v460_v25, %s1615_s15  ;;  %483 = vrot.lane.b32.xlu0 %v479_v26, %s1614_s13  ;;  %v193_v25 = vstv %s1847_s18  ;;  %s2045_s18 = sld [smem:[#allocation3 + $0x3d]] }
  0xeb   :  { %v194_v39 = vmul.f32 %v193_v25, %v1711_v32  ;;  %v195_v48 = vmul.f32 %v193_v25, %v1717_v36  ;;  %v771_v25 = vstv %s1893_s24  ;;  %s2098_s24 = sld [smem:[#allocation3 + $0x40]] }
  0xee   :  { %485 = vrot.lane.b32.xlu1 %v480_v30, %s1614_s13  ;;  %497 = vrot.lane.b32.xlu0 %v493_v31, %s1615_s15 }
  0xf2   :  { %499 = vrot.lane.b32.xlu1 %v494_v35, %s1615_s15  ;;  %517 = vrot.lane.b32.xlu0 %v513_v37, %s1614_s13  ;;  %v683_v35 = vmul.f32 %v682_v23, %v1783_v22  ;;  %v1921_v23 = vld [vmem:[#allocation2 + $0x28] sm:$0x3f] }
  0xf6   :  { %519 = vrot.lane.b32.xlu1 %v514_v40, %s1614_s13  ;;  %531 = vrot.lane.b32.xlu0 %v527_v41, %s1615_s15  ;;  %v696_v40 = vstv %s1854_s19  ;;  %s2051_s19 = sld [smem:[#allocation3 + $0xf]] }
  0xfa   :  { %533 = vrot.lane.b32.xlu1 %v528_v43, %s1615_s15  ;;  %551 = vrot.lane.b32.xlu0 %v547_v44, %s1614_s13 }
  0xfe   :  { %553 = vrot.lane.b32.xlu1 %v548_v46, %s1614_s13  ;;  %565 = vrot.lane.b32.xlu0 %v561_v47, %s1615_s15  ;;  %v697_v46 = vmul.f32 %v696_v40, %v1783_v22 }
 0x102   :  { %567 = vrot.lane.b32.xlu1 %v562_v49, %s1615_s15  ;;  %585 = vrot.lane.b32.xlu0 %v581_v50, %s1614_s13  ;;  %v716_v49 = vstv %s1862_s20  ;;  %v438_v50 = vstv %s1867_s1  ;;  %s2060_s20 = sld [smem:[#allocation3 + $0x61]]  ;;  %s2069_s1 = sld [smem:[#allocation3 + $0x3e]] }
 0x106   :  { %587 = vrot.lane.b32.xlu1 %v582_v52, %s1614_s13  ;;  %599 = vrot.lane.b32.xlu0 %v595_v53, %s1615_s15 }
 0x10a   :  { %601 = vrot.lane.b32.xlu1 %v596_v55, %s1615_s15  ;;  %619 = vrot.lane.b32.xlu0 %v615_v56, %s1614_s13  ;;  %v698_v55 = vmul.f32 %v696_v40, %v1789_v27  ;;  %v717_v56 = vmul.f32 %v716_v49, %v1795_v33  ;;  %v1931_v40 = vld [vmem:[#allocation2 + $0x21] sm:$0xff] }
 0x10c   :  { %v137_v59 = vpop.permute.xlu0 %136 }
 0x10d   :  { %v142_v1 = vadd.f32 %v137_v59, %v126_v62  ;;  %v439_v59 = vmul.f32 %v438_v50, %v1769_v10 }
 0x10e   :  { %621 = vrot.lane.b32.xlu1 %v616_v60, %s1614_s13  ;;  %633 = vrot.lane.b32.xlu0 %v629_v61, %s1615_s15  ;;  %v227_v60 = vstv %s1877_s21  ;;  %s2080_s21 = sld [smem:[#allocation3 + $0x62]] }
 0x110   :  { %v139_v2 = vpop.permute.xlu1 %138  ;;  %v151_v3 = vpop.permute.xlu0 %150 }
 0x111   :  { %v156_v7 = vadd.f32 %v151_v3, %v142_v1  ;;  %v143_v11 = vadd.f32 %v139_v2, %v127_v6  ;;  %v718_v1 = vmul.f32 %v716_v49, %v1801_v38  ;;  %v731_v2 = vmul.f32 %v730_v58, %v1795_v33 }
 0x112   :  { %635 = vrot.lane.b32.xlu1 %v630_v4, %s1615_s15  ;;  %653 = vrot.lane.b32.xlu0 %v649_v5, %s1614_s13  ;;  %v228_v4 = vmul.f32 %v227_v60, %v1682_v14  ;;  %v1904_v5 = vld [vmem:[#allocation2 + $0x20] sm:$0xff]  ;;  %v757_v6 = vstv %s1883_s22  ;;  %s2088_s22 = sld [smem:[#allocation3 + $0x1c]] }
 0x113   :  { %v162_v12 = vadd.f32 %v160_v8, %v156_v7  ;;  %v440_v7 = vmul.f32 %v438_v50, %v1777_v17  ;;  %v261_v8 = vstv %s1887_s23  ;;  %s2092_s23 = sld [smem:[#allocation3 + $0x30]] }
 0x114   :  { %v153_v13 = vpop.permute.xlu1 %152  ;;  %v171_v15 = vpop.permute.xlu0 %170 }
 0x115   :  { %v157_v20 = vadd.f32 %v153_v13, %v143_v11  ;;  %v176_v26 = vadd.f32 %v171_v15, %v162_v12  ;;  %v732_v15 = vmul.f32 %v730_v58, %v1801_v38 }
 0x116   :  { %655 = vrot.lane.b32.xlu1 %v650_v16, %s1614_s13  ;;  %667 = vrot.lane.b32.xlu0 %v663_v18, %s1615_s15  ;;  %v758_v16 = vmul.f32 %v757_v6, %v1904_v5  ;;  %v229_v18 = vmul.f32 %v227_v60, %v1691_v19 }
 0x117   :  { %v163_v29 = vadd.f32 %v161_v21, %v157_v20  ;;  %v262_v21 = vmul.f32 %v261_v8, %v1697_v24 }
 0x118   :  { %v173_v30 = vpop.permute.xlu1 %172  ;;  %v185_v31 = vpop.permute.xlu0 %184 }
 0x119   :  { %v190_v37 = vadd.f32 %v185_v31, %v176_v26  ;;  %v177_v41 = vadd.f32 %v173_v30, %v163_v29 }
 0x11a   :  { %669 = vrot.lane.b32.xlu1 %v664_v34, %s1615_s15  ;;  %687 = vrot.lane.b32.xlu0 %v683_v35, %s1614_s13  ;;  %v759_v34 = vmul.f32 %v757_v6, %v1921_v23  ;;  %v772_v35 = vmul.f32 %v771_v25, %v1904_v5 }
 0x11b   :  { %v196_v42 = vadd.f32 %v194_v39, %v190_v37  ;;  %v263_v39 = vmul.f32 %v261_v8, %v1704_v28 }
 0x11c   :  { %v187_v43 = vpop.permute.xlu1 %186  ;;  %v205_v44 = vpop.permute.xlu0 %204 }
 0x11d   :  { %v191_v47 = vadd.f32 %v187_v43, %v177_v41  ;;  %v210_v51 = vadd.f32 %v205_v44, %v196_v42  ;;  %v791_v41 = vstv %s1907_s25  ;;  %v295_v42 = vstv %s1913_s26  ;;  %s2111_s25 = sld [smem:[#allocation3 + $0x64]]  ;;  %s2117_s26 = sld [smem:[#allocation3 + $0x33]] }
 0x11e   :  { %689 = vrot.lane.b32.xlu1 %v684_v45, %s1614_s13  ;;  %701 = vrot.lane.b32.xlu0 %v697_v46, %s1615_s15  ;;  %v296_v50 = vmul.f32 %v295_v42, %v1711_v32  ;;  %v297_v60 = vmul.f32 %v295_v42, %v1717_v36 }
 0x11f   :  { %v197_v52 = vadd.f32 %v195_v48, %v191_v47  ;;  %v773_v47 = vmul.f32 %v771_v25, %v1921_v23  ;;  %v792_v48 = vmul.f32 %v791_v41, %v1931_v40 }
 0x120   :  { %v207_v53 = vpop.permute.xlu1 %206  ;;  %v219_v54 = vpop.permute.xlu0 %218 }
 0x121   :  { %v224_v57 = vadd.f32 %v219_v54, %v210_v51  ;;  %v211_v61 = vadd.f32 %v207_v53, %v197_v52  ;;  %v1944_v51 = vld [vmem:[#allocation2 + $0x29] sm:$0x3f]  ;;  %v805_v52 = vstv %s1924_s27  ;;  %s2128_s27 = sld [smem:[#allocation3 + $0x1d]] }
 0x122   :  { %703 = vrot.lane.b32.xlu1 %v698_v55, %s1615_s15  ;;  %721 = vrot.lane.b32.xlu0 %v717_v56, %s1614_s13  ;;  %v806_v58 = vmul.f32 %v805_v52, %v1931_v40  ;;  %v807_v6 = vmul.f32 %v805_v52, %v1944_v51 }
 0x123   :  { %v1899_v62 = vadd.f32 %v439_v59, %v224_v57  ;;  %v793_v57 = vmul.f32 %v791_v41, %v1944_v51 }
 0x124   :  { %v221_v63 = vpop.permute.xlu1 %220  ;;  %v239_v0 = vpop.permute.xlu0 %238 }
 0x125   :  { %v225_v3 = vadd.f32 %v221_v63, %v211_v61  ;;  %v244_v9 = vadd.f32 %v239_v0, %v228_v4  ;;  %v1956_v61 = vld [vmem:[#allocation2 + $0x22] sm:$0xff]  ;;  %v825_v63 = vstv %s1934_s28  ;;  %v540_v0 = vstv %s1939_s29  ;;  %s2136_s28 = sld [smem:[#allocation3 + $0x41]]  ;;  %s2141_s29 = sld [smem:[#allocation3 + $0x36]] }
 0x126   :  { %723 = vrot.lane.b32.xlu1 %v718_v1, %s1614_s13  ;;  %735 = vrot.lane.b32.xlu0 %v731_v2, %s1615_s15 }
 0x127   :  { %v1915_v11 = vadd.f32 %v440_v7, %v225_v3  ;;  %v826_v7 = vmul.f32 %v825_v63, %v1956_v61 }
 0x128   :  { %v241_v12 = vpop.permute.xlu1 %240  ;;  %v253_v13 = vpop.permute.xlu0 %252 }
 0x129   :  { %v258_v20 = vadd.f32 %v253_v13, %v244_v9  ;;  %v245_v26 = vadd.f32 %v241_v12, %v229_v18  ;;  %v1968_v9 = vld [vmem:[#allocation2 + $0x2a] sm:$0x3f]  ;;  %v839_v12 = vstv %s1947_s30  ;;  %v541_v13 = vmul.f32 %v540_v0, %v1769_v10  ;;  %s2147_s30 = sld [smem:[#allocation3 + $0x65]] }
 0x12a   :  { %737 = vrot.lane.b32.xlu1 %v732_v15, %s1615_s15  ;;  %762 = vrot.lane.b32.xlu0 %v758_v16, %s1614_s13  ;;  %v329_v15 = vstv %s1951_s4  ;;  %v827_v25 = vmul.f32 %v825_v63, %v1968_v9  ;;  %s2155_s4 = sld [smem:[#allocation3 + $0x1f]] }
 0x12b   :  { %v264_v29 = vadd.f32 %v262_v21, %v258_v20 }
 0x12c   :  { %v255_v30 = vpop.permute.xlu1 %254  ;;  %v273_v31 = vpop.permute.xlu0 %272 }
 0x12d   :  { %v259_v37 = vadd.f32 %v255_v30, %v245_v26  ;;  %v278_v43 = vadd.f32 %v273_v31, %v264_v29  ;;  %v840_v26 = vmul.f32 %v839_v12, %v1956_v61  ;;  %v330_v30 = vmul.f32 %v329_v15, %v1682_v14 }
 0x12e   :  { %764 = vrot.lane.b32.xlu1 %v759_v34, %s1614_s13  ;;  %776 = vrot.lane.b32.xlu0 %v772_v35, %s1615_s15  ;;  %v859_v31 = vstv %s1959_s5  ;;  %v542_v34 = vmul.f32 %v540_v0, %v1777_v17  ;;  %v363_v35 = vstv %s1963_s6  ;;  %v841_v14 = vmul.f32 %v839_v12, %v1968_v9  ;;  %s2159_s5 = sld [smem:[#allocation3 + $0x54]]  ;;  %s2165_s6 = sld [smem:[#allocation3 + $0x43]] }
 0x12f   :  { %v265_v44 = vadd.f32 %v263_v39, %v259_v37 }
 0x130   :  { %v275_v45 = vpop.permute.xlu1 %274  ;;  %v287_v46 = vpop.permute.xlu0 %286 }
 0x131   :  { %v292_v49 = vadd.f32 %v287_v46, %v278_v43  ;;  %v279_v53 = vadd.f32 %v275_v45, %v265_v44  ;;  %v860_v43 = vmul.f32 %v859_v31, %v1904_v5  ;;  %v331_v44 = vmul.f32 %v329_v15, %v1691_v19 }
 0x132   :  { %778 = vrot.lane.b32.xlu1 %v773_v47, %s1615_s15  ;;  %796 = vrot.lane.b32.xlu0 %v792_v48, %s1614_s13  ;;  %v364_v46 = vmul.f32 %v363_v35, %v1697_v24  ;;  %v961_v47 = vstv %s1971_s7  ;;  %v365_v24 = vmul.f32 %v363_v35, %v1704_v28  ;;  %v893_v15 = vstv %s2006_s11  ;;  %s2178_s7 = sld [smem:[#allocation3 + $0x67]]  ;;  %s2208_s11 = sld [smem:[#allocation3 + $0x5a]] }
 0x133   :  { %v298_v54 = vadd.f32 %v296_v50, %v292_v49  ;;  %v963_v63 = vmul.f32 %v961_v47, %v1921_v23 }
 0x134   :  { %v289_v55 = vpop.permute.xlu1 %288  ;;  %v307_v56 = vpop.permute.xlu0 %306 }
 0x135   :  { %v293_v59 = vadd.f32 %v289_v55, %v279_v53  ;;  %v312_v1 = vadd.f32 %v307_v56, %v298_v54  ;;  %v861_v53 = vmul.f32 %v859_v31, %v1921_v23  ;;  %v962_v54 = vmul.f32 %v961_v47, %v1904_v5 }
 0x136   :  { %798 = vrot.lane.b32.xlu1 %v793_v57, %s1614_s13  ;;  %810 = vrot.lane.b32.xlu0 %v806_v58, %s1615_s15  ;;  %v873_v55 = vstv %s1983_s8  ;;  %v397_v56 = vstv %s1989_s9  ;;  %s2184_s8 = sld [smem:[#allocation3 + $0x57]]  ;;  %s2195_s9 = sld [smem:[#allocation3 + $0x20]] }
 0x137   :  { %v299_v2 = vadd.f32 %v297_v60, %v293_v59  ;;  %v874_v0 = vmul.f32 %v873_v55, %v1904_v5  ;;  %v995_v31 = vstv %s2017_s12  ;;  %s2222_s12 = sld [smem:[#allocation3 + $0x22]] }
 0x138   :  { %v309_v3 = vpop.permute.xlu1 %308  ;;  %v321_v4 = vpop.permute.xlu0 %320 }
 0x139   :  { %v326_v8 = vadd.f32 %v321_v4, %v312_v1  ;;  %v313_v16 = vadd.f32 %v309_v3, %v299_v2  ;;  %v398_v1 = vmul.f32 %v397_v56, %v1711_v32  ;;  %v975_v2 = vstv %s1998_s10  ;;  %s2203_s10 = sld [smem:[#allocation3 + $0x44]] }
 0x13a   :  { %812 = vrot.lane.b32.xlu1 %v807_v6, %s1615_s15  ;;  %830 = vrot.lane.b32.xlu0 %v826_v7, %s1614_s13  ;;  %v976_v12 = vmul.f32 %v975_v2, %v1904_v5  ;;  %v399_v32 = vmul.f32 %v397_v56, %v1717_v36 }
 0x13b   :  { %v1977_v18 = vadd.f32 %v541_v13, %v326_v8  ;;  %v875_v8 = vmul.f32 %v873_v55, %v1921_v23 }
 0x13c   :  { %v323_v20 = vpop.permute.xlu1 %322  ;;  %v341_v21 = vpop.permute.xlu0 %340 }
 0x13d   :  { %v327_v29 = vadd.f32 %v323_v20, %v313_v16  ;;  %v346_v37 = vadd.f32 %v341_v21, %v330_v30  ;;  %v642_v16 = vstv %s2011_s0  ;;  %v894_v30 = vmul.f32 %v893_v15, %v1931_v40  ;;  %s2214_s0 = sld [smem:[#allocation3 + $0x68]] }
 0x13e   :  { %832 = vrot.lane.b32.xlu1 %v827_v25, %s1614_s13  ;;  %844 = vrot.lane.b32.xlu0 %v840_v26, %s1615_s15 }
 0x13f   :  { %v1991_v39 = vadd.f32 %v542_v34, %v327_v29  ;;  %v977_v29 = vmul.f32 %v975_v2, %v1921_v23  ;;  %v643_v34 = vmul.f32 %v642_v16, %v1769_v10  ;;  %v644_v10 = vmul.f32 %v642_v16, %v1777_v17 }
 0x140   :  { %v343_v41 = vpop.permute.xlu1 %342  ;;  %v355_v42 = vpop.permute.xlu0 %354 }
 0x141   :  { %v360_v45 = vadd.f32 %v355_v42, %v346_v37  ;;  %v347_v48 = vadd.f32 %v343_v41, %v331_v44 }
 0x142   :  { %846 = vrot.lane.b32.xlu1 %v841_v14, %s1615_s15  ;;  %864 = vrot.lane.b32.xlu0 %v860_v43, %s1614_s13  ;;  %v895_v14 = vmul.f32 %v893_v15, %v1944_v51  ;;  %v996_v43 = vmul.f32 %v995_v31, %v1931_v40 }
 0x143   :  { %v366_v49 = vadd.f32 %v364_v46, %v360_v45  ;;  %v907_v45 = vstv %s2025_s14  ;;  %v472_v46 = vstv %s2029_s16  ;;  %s2226_s14 = sld [smem:[#allocation3 + $0x15]]  ;;  %s2232_s16 = sld [smem:[#allocation3 + $0x46]] }
 0x144   :  { %v357_v50 = vpop.permute.xlu1 %356  ;;  %v375_v52 = vpop.permute.xlu0 %374  ;;  %v473_v17 = vmul.f32 %v472_v46, %v1783_v22 }
 0x145   :  { %v361_v19 = vadd.f32 %v357_v50, %v347_v48  ;;  %v380_v57 = vadd.f32 %v375_v52, %v366_v49  ;;  %v997_v52 = vmul.f32 %v995_v31, %v1944_v51 }
 0x146   :  { %866 = vrot.lane.b32.xlu1 %v861_v53, %s1614_s13  ;;  %966 = vrot.lane.b32.xlu0 %v962_v54, %s1614_s13  ;;  %v908_v53 = vmul.f32 %v907_v45, %v1931_v40 }
 0x147   :  { %v367_v58 = vadd.f32 %v365_v24, %v361_v19  ;;  %v1009_v19 = vstv %s2035_s17  ;;  %s2245_s17 = sld [smem:[#allocation3 + $0x6a]] }
 0x148   :  { %v377_v59 = vpop.permute.xlu1 %376  ;;  %v389_v60 = vpop.permute.xlu0 %388 }
 0x149   :  { %v394_v28 = vadd.f32 %v389_v60, %v380_v57  ;;  %v381_v3 = vadd.f32 %v377_v59, %v367_v58  ;;  %v909_v57 = vmul.f32 %v907_v45, %v1944_v51  ;;  %v1010_v58 = vmul.f32 %v1009_v19, %v1931_v40 }
 0x14a   :  { %968 = vrot.lane.b32.xlu1 %v963_v63, %s1614_s13  ;;  %878 = vrot.lane.b32.xlu0 %v874_v0, %s1615_s15  ;;  %v474_v60 = vmul.f32 %v472_v46, %v1789_v27  ;;  %v927_v63 = vstv %s2045_s18  ;;  %v506_v0 = vstv %s2051_s19  ;;  %s2251_s18 = sld [smem:[#allocation3 + $0x18]]  ;;  %s2262_s19 = sld [smem:[#allocation3 + $0x23]] }
 0x14b   :  { %v400_v4 = vadd.f32 %v398_v1, %v394_v28  ;;  %v929_v16 = vmul.f32 %v927_v63, %v1968_v9 }
 0x14c   :  { %v391_v6 = vpop.permute.xlu1 %390  ;;  %v409_v7 = vpop.permute.xlu0 %408 }
 0x14d   :  { %v395_v13 = vadd.f32 %v391_v6, %v381_v3  ;;  %v414_v20 = vadd.f32 %v409_v7, %v400_v4  ;;  %v1011_v3 = vmul.f32 %v1009_v19, %v1944_v51  ;;  %v928_v4 = vmul.f32 %v927_v63, %v1956_v61 }
 0x14e   :  { %880 = vrot.lane.b32.xlu1 %v875_v8, %s1615_s15  ;;  %980 = vrot.lane.b32.xlu0 %v976_v12, %s1615_s15  ;;  %v507_v7 = vmul.f32 %v506_v0, %v1795_v33  ;;  %v1029_v8 = vstv %s2060_s20  ;;  %v574_v19 = vstv %s2092_s23  ;;  %s2270_s20 = sld [smem:[#allocation3 + $0x47]] }
 0x14f   :  { %v401_v21 = vadd.f32 %v399_v32, %v395_v13  ;;  %v1172_v63 = vstv %s2098_s24  ;;  %s1522_s23 = sld [smem:[#allocation3 + $0x3f]]  ;;  %s1531_s24 = sld [smem:[#allocation3 + $0x63]] }
 0x150   :  { %v411_v25 = vpop.permute.xlu1 %410  ;;  %v423_v26 = vpop.permute.xlu0 %422 }
 0x151   :  { %v428_v36 = vadd.f32 %v423_v26, %v414_v20  ;;  %v415_v35 = vadd.f32 %v411_v25, %v401_v21  ;;  %v1030_v20 = vmul.f32 %v1029_v8, %v1956_v61  ;;  %v508_v25 = vmul.f32 %v506_v0, %v1801_v38 }
 0x152   :  { %982 = vrot.lane.b32.xlu1 %v977_v29, %s1615_s15  ;;  %898 = vrot.lane.b32.xlu0 %v894_v30, %s1614_s13  ;;  %v941_v26 = vstv %s2069_s1  ;;  %v751_v29 = vstv %s2074_s2  ;;  %s2275_s1 = sld [smem:[#allocation3 + $0x1b]] }
 0x153   :  { %v2040_v37 = vadd.f32 %v643_v34, %v428_v36  ;;  %s2281_s2 = sld [smem:[#allocation3 + $0x6b]] }
 0x154   :  { %v425_v41 = vpop.permute.xlu1 %424  ;;  %v450_v42 = vpop.permute.xlu0 %449 }
 0x155   :  { %v429_v44 = vadd.f32 %v425_v41, %v415_v35  ;;  %v455_v47 = vadd.f32 %v450_v42, %v1899_v62  ;;  %v1031_v35 = vmul.f32 %v1029_v8, %v1968_v9  ;;  %v942_v41 = vmul.f32 %v941_v26, %v1956_v61 }
 0x156   :  { %900 = vrot.lane.b32.xlu1 %v895_v14, %s1614_s13  ;;  %1000 = vrot.lane.b32.xlu0 %v996_v43, %s1614_s13  ;;  %v1043_v14 = vstv %s2080_s21  ;;  %v752_v43 = vmul.f32 %v751_v29, %v1904_v5  ;;  %s1507_s21 = sld [smem:[#allocation3 + $0x5d]] }
 0x157   :  { %v2054_v48 = vadd.f32 %v644_v10, %v429_v44 }
 0x158   :  { %v452_v49 = vpop.permute.xlu1 %451  ;;  %v464_v50 = vpop.permute.xlu0 %463 }
 0x159   :  { %v469_v54 = vadd.f32 %v464_v50, %v455_v47  ;;  %v456_v62 = vadd.f32 %v452_v49, %v1915_v11  ;;  %v943_v47 = vmul.f32 %v941_v26, %v1968_v9  ;;  %v1044_v49 = vmul.f32 %v1043_v14, %v1956_v61 }
 0x15a   :  { %1002 = vrot.lane.b32.xlu1 %v997_v52, %s1614_s13  ;;  %912 = vrot.lane.b32.xlu0 %v908_v53, %s1615_s15  ;;  %v2108_v53 = vld [vmem:[#allocation2 + $0x30] sm:$0xff] }
 0x15b   :  { %v475_v24 = vadd.f32 %v473_v17, %v469_v54  ;;  %v1070_v54 = vstv %s2088_s22  ;;  %v753_v17 = vmul.f32 %v751_v29, %v1921_v23  ;;  %s1501_s22 = sld [smem:[#allocation3 + $0x3c]] }
 0x15c   :  { %v466_v55 = vpop.permute.xlu1 %465  ;;  %v484_v56 = vpop.permute.xlu0 %483 }
 0x15d   :  { %v470_v59 = vadd.f32 %v466_v55, %v456_v62  ;;  %v489_v11 = vadd.f32 %v484_v56, %v475_v24  ;;  %v1071_v56 = vmul.f32 %v1070_v54, %v2108_v53 }
 0x15e   :  { %914 = vrot.lane.b32.xlu1 %v909_v57, %s1615_s15  ;;  %1014 = vrot.lane.b32.xlu0 %v1010_v58, %s1615_s15 }
 0x15f   :  { %v476_v28 = vadd.f32 %v474_v60, %v470_v59  ;;  %v575_v59 = vmul.f32 %v574_v19, %v1783_v22  ;;  %v2125_v60 = vld [vmem:[#allocation2 + $0x38] sm:$0x3f] }
 0x160   :  { %v486_v1 = vpop.permute.xlu1 %485  ;;  %v498_v2 = vpop.permute.xlu0 %497 }
 0x161   :  { %v503_v6 = vadd.f32 %v498_v2, %v489_v11  ;;  %v490_v12 = vadd.f32 %v486_v1, %v476_v28  ;;  %v1072_v1 = vmul.f32 %v1070_v54, %v2125_v60 }
 0x162   :  { %1016 = vrot.lane.b32.xlu1 %v1011_v3, %s1615_s15  ;;  %932 = vrot.lane.b32.xlu0 %v928_v4, %s1614_s13  ;;  %v576_v4 = vmul.f32 %v574_v19, %v1789_v27 }
 0x163   :  { %v509_v13 = vadd.f32 %v507_v7, %v503_v6  ;;  %v1274_v6 = vstv %s2111_s25  ;;  %v608_v7 = vstv %s2117_s26  ;;  %s1516_s25 = sld [smem:[#allocation3 + $0x1e]]  ;;  %s1525_s26 = sld [smem:[#allocation3 + $0x42]] }
 0x164   :  { %v500_v32 = vpop.permute.xlu1 %499  ;;  %v518_v15 = vpop.permute.xlu0 %517 }
 0x165   :  { %v504_v21 = vadd.f32 %v500_v32, %v490_v12  ;;  %v523_v30 = vadd.f32 %v518_v15, %v509_v13  ;;  %v1174_v32 = vmul.f32 %v1172_v63, %v2125_v60  ;;  %v1275_v15 = vmul.f32 %v1274_v6, %v2108_v53 }
 0x166   :  { %934 = vrot.lane.b32.xlu1 %v929_v16, %s1614_s13  ;;  %1034 = vrot.lane.b32.xlu0 %v1030_v20, %s1614_s13 }
 0x167   :  { %v510_v36 = vadd.f32 %v508_v25, %v504_v21  ;;  %v609_v21 = vmul.f32 %v608_v7, %v1795_v33  ;;  %v1084_v25 = vstv %s2128_s27  ;;  %s2328_s27 = sld [smem:[#allocation3 + $0x66]] }
 0x168   :  { %v520_v31 = vpop.permute.xlu1 %519  ;;  %v532_v34 = vpop.permute.xlu0 %531 }
 0x169   :  { %v537_v42 = vadd.f32 %v532_v34, %v523_v30  ;;  %v524_v44 = vadd.f32 %v520_v31, %v510_v36  ;;  %v1276_v36 = vmul.f32 %v1274_v6, %v2125_v60  ;;  %v1085_v31 = vmul.f32 %v1084_v25, %v2108_v53  ;;  %v2192_v6 = vld [vmem:[#allocation2 + $0x39] sm:$0x3f] }
 0x16a   :  { %1036 = vrot.lane.b32.xlu1 %v1031_v35, %s1614_s13  ;;  %946 = vrot.lane.b32.xlu0 %v942_v41, %s1615_s15  ;;  %v610_v41 = vmul.f32 %v608_v7, %v1801_v38  ;;  %v1206_v7 = vstv %s2165_s6  ;;  %s2348_s6 = sld [smem:[#allocation5 + $0x2]] }
 0x16b   :  { %v2103_v45 = vadd.f32 %v752_v43, %v537_v42  ;;  %v1186_v42 = vstv %s2136_s28  ;;  %s1519_s28 = sld [smem:[#allocation3 + $0x21]] }
 0x16c   :  { %v534_v10 = vpop.permute.xlu1 %533  ;;  %v552_v46 = vpop.permute.xlu0 %551 }
 0x16d   :  { %v538_v50 = vadd.f32 %v534_v10, %v524_v44  ;;  %v557_v52 = vadd.f32 %v552_v46, %v1977_v18  ;;  %v1045_v18 = vmul.f32 %v1043_v14, %v1968_v9  ;;  %v853_v14 = vstv %s2141_s29  ;;  %s1528_s29 = sld [smem:[#allocation3 + $0x45]] }
 0x16e   :  { %948 = vrot.lane.b32.xlu1 %v943_v47, %s1615_s15  ;;  %1048 = vrot.lane.b32.xlu0 %v1044_v49, %s1615_s15  ;;  %v1086_v46 = vmul.f32 %v1084_v25, %v2125_v60  ;;  %v1187_v47 = vmul.f32 %v1186_v42, %v2108_v53  ;;  %v854_v54 = vmul.f32 %v853_v14, %v1904_v5 }
 0x16f   :  { %v2119_v62 = vadd.f32 %v753_v17, %v538_v50 }
 0x170   :  { %v554_v24 = vpop.permute.xlu1 %553  ;;  %v566_v55 = vpop.permute.xlu0 %565 }
 0x171   :  { %v558_v57 = vadd.f32 %v554_v24, %v1991_v39  ;;  %v571_v58 = vadd.f32 %v566_v55, %v557_v52  ;;  %v1173_v39 = vmul.f32 %v1172_v63, %v2108_v53  ;;  %v1288_v52 = vstv %s2147_s30  ;;  %s2339_s30 = sld [smem:[#allocation3 + $0x69]] }
 0x172   :  { %1050 = vrot.lane.b32.xlu1 %v1045_v18, %s1615_s15  ;;  %1075 = vrot.lane.b32.xlu0 %v1071_v56, %s1614_s13  ;;  %v1188_v55 = vmul.f32 %v1186_v42, %v2125_v60  ;;  %v1289_v18 = vmul.f32 %v1288_v52, %v2108_v53  ;;  %v855_v63 = vmul.f32 %v853_v14, %v1921_v23 }
 0x173   :  { %v577_v0 = vadd.f32 %v575_v59, %v571_v58  ;;  %v2175_v58 = vld [vmem:[#allocation2 + $0x31] sm:$0xff]  ;;  %v1104_v59 = vstv %s2155_s4  ;;  %s1369_s4 = sld [smem:[#allocation5]] }
 0x174   :  { %v568_v11 = vpop.permute.xlu1 %567  ;;  %v586_v28 = vpop.permute.xlu0 %585 }
 0x175   :  { %v572_v2 = vadd.f32 %v568_v11, %v558_v57  ;;  %v591_v3 = vadd.f32 %v586_v28, %v577_v0  ;;  %v676_v0 = vstv %s2159_s5  ;;  %s1542_s5 = sld [smem:[#allocation5 + $0x1]] }
 0x176   :  { %1077 = vrot.lane.b32.xlu1 %v1072_v1, %s1614_s13  ;;  %1177 = vrot.lane.b32.xlu0 %v1173_v39, %s1614_s13  ;;  %v1105_v39 = vmul.f32 %v1104_v59, %v2175_v58 }
 0x177   :  { %v578_v8 = vadd.f32 %v576_v4, %v572_v2  ;;  %v677_v4 = vmul.f32 %v676_v0, %v1783_v22  ;;  %v678_v22 = vmul.f32 %v676_v0, %v1789_v27 }
 0x178   :  { %v588_v12 = vpop.permute.xlu1 %587  ;;  %v600_v13 = vpop.permute.xlu0 %599 }
 0x179   :  { %v592_v16 = vadd.f32 %v588_v12, %v578_v8  ;;  %v605_v20 = vadd.f32 %v600_v13, %v591_v3 }
 0x17a   :  { %1179 = vrot.lane.b32.xlu1 %v1174_v32, %s1614_s13  ;;  %1279 = vrot.lane.b32.xlu0 %v1275_v15, %s1614_s13  ;;  %v1106_v32 = vmul.f32 %v1104_v59, %v2192_v6 }
 0x17b   :  { %v611_v26 = vadd.f32 %v609_v21, %v605_v20  ;;  %v1308_v20 = vstv %s2178_s7  ;;  %v710_v21 = vstv %s2184_s8 }
 0x17c   :  { %v602_v29 = vpop.permute.xlu1 %601  ;;  %v620_v30 = vpop.permute.xlu0 %619 }
 0x17d   :  { %v606_v34 = vadd.f32 %v602_v29, %v592_v16  ;;  %v625_v35 = vadd.f32 %v620_v30, %v611_v26  ;;  %v1208_v30 = vmul.f32 %v1206_v7, %v2192_v6 }
 0x17e   :  { %1281 = vrot.lane.b32.xlu1 %v1276_v36, %s1614_s13  ;;  %1089 = vrot.lane.b32.xlu0 %v1085_v31, %s1615_s15  ;;  %v1309_v36 = vmul.f32 %v1308_v20, %v2175_v58 }
 0x17f   :  { %v612_v43 = vadd.f32 %v610_v41, %v606_v34  ;;  %v711_v34 = vmul.f32 %v710_v21, %v1795_v33  ;;  %v712_v33 = vmul.f32 %v710_v21, %v1801_v38 }
 0x180   :  { %v622_v44 = vpop.permute.xlu1 %621  ;;  %v634_v10 = vpop.permute.xlu0 %633 }
 0x181   :  { %v626_v49 = vadd.f32 %v622_v44, %v612_v43  ;;  %v639_v50 = vadd.f32 %v634_v10, %v625_v35  ;;  %v1118_v35 = vstv %s2195_s9  ;;  %v1310_v43 = vmul.f32 %v1308_v20, %v2192_v6 }
 0x182   :  { %1091 = vrot.lane.b32.xlu1 %v1086_v46, %s1615_s15  ;;  %1191 = vrot.lane.b32.xlu0 %v1187_v47, %s1615_s15  ;;  %v1119_v44 = vmul.f32 %v1118_v35, %v2175_v58  ;;  %v1220_v47 = vstv %s2203_s10 }
 0x183   :  { %v2170_v17 = vadd.f32 %v854_v54, %v639_v50  ;;  %v1222_v0 = vmul.f32 %v1220_v47, %v2192_v6 }
 0x184   :  { %v636_v19 = vpop.permute.xlu1 %635  ;;  %v654_v24 = vpop.permute.xlu0 %653 }
 0x185   :  { %v640_v56 = vadd.f32 %v636_v19, %v626_v49  ;;  %v659_v57 = vadd.f32 %v654_v24, %v2040_v37  ;;  %v1290_v37 = vmul.f32 %v1288_v52, %v2125_v60  ;;  %v955_v49 = vstv %s2208_s11 }
 0x186   :  { %1193 = vrot.lane.b32.xlu1 %v1188_v55, %s1615_s15  ;;  %1293 = vrot.lane.b32.xlu0 %v1289_v18, %s1615_s15  ;;  %v1120_v19 = vmul.f32 %v1118_v35, %v2192_v6  ;;  %v1221_v24 = vmul.f32 %v1220_v47, %v2175_v58  ;;  %v1322_v18 = vstv %s2214_s0 }
 0x187   :  { %v2186_v11 = vadd.f32 %v855_v63, %v640_v56  ;;  %v956_v56 = vmul.f32 %v955_v49, %v1904_v5  ;;  %v957_v5 = vmul.f32 %v955_v49, %v1921_v23 }
 0x188   :  { %v656_v28 = vpop.permute.xlu1 %655  ;;  %v668_v1 = vpop.permute.xlu0 %667 }
 0x189   :  { %v660_v2 = vadd.f32 %v656_v28, %v2054_v48  ;;  %v673_v3 = vadd.f32 %v668_v1, %v659_v57  ;;  %v1207_v48 = vmul.f32 %v1206_v7, %v2175_v58  ;;  %v1323_v28 = vmul.f32 %v1322_v18, %v2175_v58 }
 0x18a   :  { %1295 = vrot.lane.b32.xlu1 %v1290_v37, %s1615_s15  ;;  %1109 = vrot.lane.b32.xlu0 %v1105_v39, %s1614_s13  ;;  %v2242_v39 = vld [vmem:[#allocation2 + $0x32] sm:$0xff] }
 0x18b   :  { %v679_v8 = vadd.f32 %v677_v4, %v673_v3  ;;  %v785_v3 = vstv %s2226_s14 }
 0x18c   :  { %v670_v12 = vpop.permute.xlu1 %669  ;;  %v688_v13 = vpop.permute.xlu0 %687  ;;  %v786_v23 = vmul.f32 %v785_v3, %v1931_v40 }
 0x18d   :  { %v674_v15 = vadd.f32 %v670_v12, %v660_v2  ;;  %v693_v16 = vadd.f32 %v688_v13, %v679_v8  ;;  %v1138_v2 = vstv %s2222_s12 }
 0x18e   :  { %1111 = vrot.lane.b32.xlu1 %v1106_v32, %s1614_s13  ;;  %1211 = vrot.lane.b32.xlu0 %v1207_v48, %s1614_s13  ;;  %v1139_v12 = vmul.f32 %v1138_v2, %v2242_v39  ;;  %v2259_v48 = vld [vmem:[#allocation2 + $0x3a] sm:$0x3f] }
 0x18f   :  { %v680_v25 = vadd.f32 %v678_v22, %v674_v15  ;;  %v1240_v15 = vstv %s2232_s16  ;;  %v1140_v21 = vmul.f32 %v1138_v2, %v2259_v48 }
 0x190   :  { %v690_v26 = vpop.permute.xlu1 %689  ;;  %v702_v29 = vpop.permute.xlu0 %701  ;;  %v1242_v35 = vmul.f32 %v1240_v15, %v2259_v48 }
 0x191   :  { %v694_v31 = vadd.f32 %v690_v26, %v680_v25  ;;  %v707_v27 = vadd.f32 %v702_v29, %v693_v16  ;;  %v787_v29 = vmul.f32 %v785_v3, %v1944_v51 }
 0x192   :  { %1213 = vrot.lane.b32.xlu1 %v1208_v30, %s1614_s13  ;;  %1313 = vrot.lane.b32.xlu0 %v1309_v36, %s1614_s13  ;;  %v1342_v30 = vstv %s2245_s17  ;;  %v819_v36 = vstv %s2251_s18 }
 0x193   :  { %v713_v41 = vadd.f32 %v711_v34, %v707_v27  ;;  %v1344_v47 = vmul.f32 %v1342_v30, %v2259_v48 }
 0x194   :  { %v704_v42 = vpop.permute.xlu1 %703  ;;  %v722_v14 = vpop.permute.xlu0 %721 }
 0x195   :  { %v708_v10 = vadd.f32 %v704_v42, %v694_v31  ;;  %v727_v46 = vadd.f32 %v722_v14, %v713_v41  ;;  %v1343_v41 = vmul.f32 %v1342_v30, %v2242_v39 }
 0x196   :  { %1315 = vrot.lane.b32.xlu1 %v1310_v43, %s1614_s13  ;;  %1123 = vrot.lane.b32.xlu0 %v1119_v44, %s1615_s15  ;;  %v820_v43 = vmul.f32 %v819_v36, %v1956_v61  ;;  %v1152_v44 = vstv %s2262_s19 }
 0x197   :  { %v714_v50 = vadd.f32 %v712_v33, %v708_v10  ;;  %v1153_v49 = vmul.f32 %v1152_v44, %v2242_v39 }
 0x198   :  { %v724_v52 = vpop.permute.xlu1 %723  ;;  %v736_v54 = vpop.permute.xlu0 %735 }
 0x199   :  { %v728_v55 = vadd.f32 %v724_v52, %v714_v50  ;;  %v741_v38 = vadd.f32 %v736_v54, %v727_v46  ;;  %v821_v54 = vmul.f32 %v819_v36, %v1968_v9 }
 0x19a   :  { %1125 = vrot.lane.b32.xlu1 %v1120_v19, %s1615_s15  ;;  %1225 = vrot.lane.b32.xlu0 %v1221_v24, %s1615_s15  ;;  %v1254_v19 = vstv %s2270_s20  ;;  %v1064_v24 = vstv %s2275_s1 }
 0x19b   :  { %v2237_v57 = vadd.f32 %v956_v56, %v741_v38  ;;  %v1154_v56 = vmul.f32 %v1152_v44, %v2259_v48  ;;  %v1256_v3 = vmul.f32 %v1254_v19, %v2259_v48 }
 0x19c   :  { %v738_v59 = vpop.permute.xlu1 %737  ;;  %v763_v63 = vpop.permute.xlu0 %762 }
 0x19d   :  { %v742_v1 = vadd.f32 %v738_v59, %v728_v55  ;;  %v768_v37 = vadd.f32 %v763_v63, %v2103_v45  ;;  %v1324_v45 = vmul.f32 %v1322_v18, %v2192_v6  ;;  %v1255_v59 = vmul.f32 %v1254_v19, %v2242_v39 }
 0x19e   :  { %1227 = vrot.lane.b32.xlu1 %v1222_v0, %s1615_s15  ;;  %1327 = vrot.lane.b32.xlu0 %v1323_v28, %s1615_s15  ;;  %v1356_v28 = vstv %s2281_s2 }
 0x19f   :  { %v2253_v4 = vadd.f32 %v957_v5, %v742_v1  ;;  %v1065_v1 = vmul.f32 %v1064_v24, %v2108_v53 }
 0x1a0   :  { %v765_v7 = vpop.permute.xlu1 %764  ;;  %v777_v8 = vpop.permute.xlu0 %776 }
 0x1a1   :  { %v769_v13 = vadd.f32 %v765_v7, %v2119_v62  ;;  %v782_v32 = vadd.f32 %v777_v8, %v768_v37  ;;  %v1241_v62 = vmul.f32 %v1240_v15, %v2242_v39  ;;  %v1357_v7 = vmul.f32 %v1356_v28, %v2242_v39 }
 0x1a2   :  { %1329 = vrot.lane.b32.xlu1 %v1324_v45, %s1615_s15  ;;  %1143 = vrot.lane.b32.xlu0 %v1139_v12, %s1614_s13  ;;  %v1066_v12 = vmul.f32 %v1064_v24, %v2125_v60  ;;  %v1358_v15 = vmul.f32 %v1356_v28, %v2259_v48 }
 0x1a3   :  { %v788_v16 = vadd.f32 %v786_v23, %v782_v32 }
 0x1a4   :  { %v779_v22 = vpop.permute.xlu1 %778  ;;  %v797_v20 = vpop.permute.xlu0 %796 }
 0x1a5   :  { %v783_v25 = vadd.f32 %v779_v22, %v769_v13  ;;  %v802_v26 = vadd.f32 %v797_v20, %v788_v16 }
 0x1a6   :  { %1145 = vrot.lane.b32.xlu1 %v1140_v21, %s1614_s13  ;;  %1245 = vrot.lane.b32.xlu0 %v1241_v62, %s1614_s13 }
 0x1a7   :  { %v789_v31 = vadd.f32 %v787_v29, %v783_v25  ;;  %v989_v29 = vstv %s1507_s21 }
 0x1a8   :  { %v799_v27 = vpop.permute.xlu1 %798  ;;  %v811_v34 = vpop.permute.xlu0 %810  ;;  %v991_v44 = vmul.f32 %v989_v29, %v1944_v51 }
 0x1a9   :  { %v803_v42 = vadd.f32 %v799_v27, %v789_v31  ;;  %v816_v14 = vadd.f32 %v811_v34, %v802_v26 }
 0x1aa   :  { %1247 = vrot.lane.b32.xlu1 %v1242_v35, %s1614_s13  ;;  %1347 = vrot.lane.b32.xlu0 %v1343_v41, %s1614_s13 }
 0x1ab   :  { %v822_v10 = vadd.f32 %v820_v43, %v816_v14 }
 0x1ac   :  { %v813_v46 = vpop.permute.xlu1 %812  ;;  %v831_v33 = vpop.permute.xlu0 %830 }
 0x1ad   :  { %v817_v50 = vadd.f32 %v813_v46, %v803_v42  ;;  %v836_v52 = vadd.f32 %v831_v33, %v822_v10 }
 0x1ae   :  { %1349 = vrot.lane.b32.xlu1 %v1344_v47, %s1614_s13  ;;  %1157 = vrot.lane.b32.xlu0 %v1153_v49, %s1615_s15  ;;  %s2298_s13 = sld [smem:[#allocation3 + $0x39]] }
 0x1af   :  { %v823_v55 = vadd.f32 %v821_v54, %v817_v50  ;;  %v921_v50 = vstv %s1501_s22 }
 0x1b0   :  { %v833_v38 = vpop.permute.xlu1 %832  ;;  %v845_v18 = vpop.permute.xlu0 %844  ;;  %v922_v24 = vmul.f32 %v921_v50, %v1956_v61 }
 0x1b1   :  { %v837_v63 = vadd.f32 %v833_v38, %v823_v55  ;;  %v850_v0 = vadd.f32 %v845_v18, %v836_v52 }
 0x1b2   :  { %1159 = vrot.lane.b32.xlu1 %v1154_v56, %s1615_s15  ;;  %1259 = vrot.lane.b32.xlu0 %v1255_v59, %s1615_s15 }
 0x1b3   :  { %v2300_v37 = vadd.f32 %v1065_v1, %v850_v0 }
 0x1b4   :  { %v847_v2 = vpop.permute.xlu1 %846  ;;  %v865_v5 = vpop.permute.xlu0 %864 }
 0x1b5   :  { %v851_v8 = vadd.f32 %v847_v2, %v837_v63  ;;  %v870_v45 = vadd.f32 %v865_v5, %v2170_v17  ;;  %v887_v17 = vstv %s2298_s13 }
 0x1b6   :  { %1261 = vrot.lane.b32.xlu1 %v1256_v3, %s1615_s15  ;;  %1361 = vrot.lane.b32.xlu0 %v1357_v7, %s1615_s15  ;;  %v888_v26 = vmul.f32 %v887_v17, %v1931_v40 }
 0x1b7   :  { %v2308_v13 = vadd.f32 %v1066_v12, %v851_v8 }
 0x1b8   :  { %v867_v32 = vpop.permute.xlu1 %866  ;;  %v967_v23 = vpop.permute.xlu0 %966 }
 0x1b9   :  { %v871_v16 = vadd.f32 %v867_v32, %v2186_v11  ;;  %v972_v22 = vadd.f32 %v967_v23, %v2237_v57  ;;  %v889_v11 = vmul.f32 %v887_v17, %v1944_v51  ;;  %v990_v57 = vmul.f32 %v989_v29, %v1931_v40 }
 0x1ba   :  { %1363 = vrot.lane.b32.xlu1 %v1358_v15, %s1615_s15  ;;  %s1510_s15 = sld [smem:[#allocation3 + $0x60]]  ;;  %v923_v51 = vmul.f32 %v921_v50, %v1968_v9  ;;  %v1166_v32 = vstv %s1522_s23  ;;  %v1200_v50 = vstv %s1525_s26 }
 0x1bb   :  { %v1167_v17 = vmul.f32 %v1166_v32, %v2108_v53 }
 0x1bc   :  { %v969_v20 = vpop.permute.xlu1 %968  ;;  %v879_v21 = vpop.permute.xlu0 %878 }
 0x1bd   :  { %v973_v62 = vadd.f32 %v969_v20, %v2253_v4  ;;  %v884_v25 = vadd.f32 %v879_v21, %v870_v45 }
 0x1bf   :  { %v890_v30 = vadd.f32 %v888_v26, %v884_v25 }
 0x1c0   :  { %v881_v36 = vpop.permute.xlu1 %880  ;;  %v981_v31 = vpop.permute.xlu0 %980  ;;  %v1023_v55 = vstv %s1510_s15 }
 0x1c1   :  { %v885_v27 = vadd.f32 %v881_v36, %v871_v16  ;;  %v986_v34 = vadd.f32 %v981_v31, %v972_v22  ;;  %v1024_v0 = vmul.f32 %v1023_v55, %v1956_v61  ;;  %v1025_v7 = vmul.f32 %v1023_v55, %v1968_v9 }
 0x1c2   :  { %v1268_v61 = vstv %s1531_s24  ;;  %v1168_v9 = vmul.f32 %v1166_v32, %v2125_v60 }
 0x1c3   :  { %v891_v35 = vadd.f32 %v889_v11, %v885_v27  ;;  %v992_v41 = vadd.f32 %v990_v57, %v986_v34  ;;  %v1269_v36 = vmul.f32 %v1268_v61, %v2108_v53 }
 0x1c4   :  { %v983_v42 = vpop.permute.xlu1 %982  ;;  %v899_v14 = vpop.permute.xlu0 %898 }
 0x1c5   :  { %v987_v43 = vadd.f32 %v983_v42, %v973_v62  ;;  %v904_v4 = vadd.f32 %v899_v14, %v890_v30 }
 0x1c7   :  { %v993_v10 = vadd.f32 %v991_v44, %v987_v43 }
 0x1c8   :  { %v901_v46 = vpop.permute.xlu1 %900  ;;  %v1001_v33 = vpop.permute.xlu0 %1000 }
 0x1c9   :  { %v905_v47 = vadd.f32 %v901_v46, %v891_v35  ;;  %v1006_v49 = vadd.f32 %v1001_v33, %v992_v41  ;;  %v1270_v41 = vmul.f32 %v1268_v61, %v2125_v60 }
 0x1cc   :  { %v1003_v52 = vpop.permute.xlu1 %1002  ;;  %v913_v54 = vpop.permute.xlu0 %912 }
 0x1cd   :  { %v1007_v19 = vadd.f32 %v1003_v52, %v993_v10  ;;  %v918_v40 = vadd.f32 %v913_v54, %v904_v4  ;;  %v1098_v10 = vstv %s1516_s25 }
 0x1cf   :  { %v924_v38 = vadd.f32 %v922_v24, %v918_v40 }
 0x1d0   :  { %v915_v18 = vpop.permute.xlu1 %914  ;;  %v1015_v56 = vpop.permute.xlu0 %1014 }
 0x1d1   :  { %v919_v59 = vadd.f32 %v915_v18, %v905_v47  ;;  %v1020_v63 = vadd.f32 %v1015_v56, %v1006_v49  ;;  %v1099_v49 = vmul.f32 %v1098_v10, %v2175_v58  ;;  %v1201_v18 = vmul.f32 %v1200_v50, %v2175_v58 }
 0x1d2   :  { %v1302_v56 = vstv %s2328_s27 }
 0x1d3   :  { %v925_v28 = vadd.f32 %v923_v51, %v919_v59  ;;  %v1026_v1 = vadd.f32 %v1024_v0, %v1020_v63 }
 0x1d4   :  { %v1017_v2 = vpop.permute.xlu1 %1016  ;;  %v933_v5 = vpop.permute.xlu0 %932 }
 0x1d5   :  { %v1021_v3 = vadd.f32 %v1017_v2, %v1007_v19  ;;  %v938_v23 = vadd.f32 %v933_v5, %v924_v38  ;;  %v1100_v38 = vmul.f32 %v1098_v10, %v2192_v6  ;;  %v1303_v5 = vmul.f32 %v1302_v56, %v2175_v58 }
 0x1d7   :  { %v1027_v8 = vadd.f32 %v1025_v7, %v1021_v3 }
 0x1d8   :  { %v935_v45 = vpop.permute.xlu1 %934  ;;  %v1035_v12 = vpop.permute.xlu0 %1034 }
 0x1d9   :  { %v939_v20 = vadd.f32 %v935_v45, %v925_v28  ;;  %v1040_v21 = vadd.f32 %v1035_v12, %v1026_v1 }
 0x1dc   :  { %v1037_v15 = vpop.permute.xlu1 %1036  ;;  %v947_v16 = vpop.permute.xlu0 %946 }
 0x1dd   :  { %v952_v22 = vadd.f32 %v947_v16, %v938_v23  ;;  %v1041_v31 = vadd.f32 %v1037_v15, %v1027_v8  ;;  %v1304_v23 = vmul.f32 %v1302_v56, %v2192_v6 }
 0x1df   :  { %v1169_v62 = vadd.f32 %v1167_v17, %v952_v22 }
 0x1e0   :  { %v949_v25 = vpop.permute.xlu1 %948  ;;  %v1049_v26 = vpop.permute.xlu0 %1048 }
 0x1e1   :  { %v953_v29 = vadd.f32 %v949_v25, %v939_v20  ;;  %v1054_v30 = vadd.f32 %v1049_v26, %v1040_v21  ;;  %v1132_v20 = vstv %s1519_s28 }
 0x1e2   :  { %v1133_v26 = vmul.f32 %v1132_v20, %v2242_v39 }
 0x1e3   :  { %v1170_v27 = vadd.f32 %v1168_v9, %v953_v29  ;;  %v1271_v34 = vadd.f32 %v1269_v36, %v1054_v30  ;;  %v1234_v29 = vstv %s1528_s29 }
 0x1e4   :  { %v1051_v11 = vpop.permute.xlu1 %1050  ;;  %v1076_v57 = vpop.permute.xlu0 %1075 }
 0x1e5   :  { %v1055_v35 = vadd.f32 %v1051_v11, %v1041_v31  ;;  %v1081_v53 = vadd.f32 %v1076_v57, %v2300_v37  ;;  %v1134_v11 = vmul.f32 %v1132_v20, %v2259_v48  ;;  %v1235_v57 = vmul.f32 %v1234_v29, %v2242_v39 }
 0x1e7   :  { %v1272_v42 = vadd.f32 %v1270_v41, %v1055_v35  ;;  %v1336_v35 = vstv %s2339_s30 }
 0x1e8   :  { %v1078_v14 = vpop.permute.xlu1 %1077  ;;  %v1178_v43 = vpop.permute.xlu0 %1177 }
 0x1e9   :  { %v1082_v60 = vadd.f32 %v1078_v14, %v2308_v13  ;;  %v1183_v52 = vadd.f32 %v1178_v43, %v1169_v62  ;;  %v1202_v13 = vmul.f32 %v1200_v50, %v2192_v6 }
 0x1ec   :  { %v1180_v4 = vpop.permute.xlu1 %1179  ;;  %v1280_v44 = vpop.permute.xlu0 %1279 }
 0x1ed   :  { %v1184_v37 = vadd.f32 %v1180_v4, %v1170_v27  ;;  %v1285_v59 = vadd.f32 %v1280_v44, %v1271_v34 }
 0x1f0   :  { %v1282_v46 = vpop.permute.xlu1 %1281  ;;  %v1090_v33 = vpop.permute.xlu0 %1089 }
 0x1f1   :  { %v1095_v47 = vadd.f32 %v1090_v33, %v1081_v53  ;;  %v1286_v3 = vadd.f32 %v1282_v46, %v1272_v42  ;;  %v1236_v46 = vmul.f32 %v1234_v29, %v2259_v48  ;;  %v1337_v33 = vmul.f32 %v1336_v35, %v2242_v39 }
 0x1f3   :  { %v1101_v54 = vadd.f32 %v1099_v49, %v1095_v47 }
 0x1f4   :  { %v1092_v19 = vpop.permute.xlu1 %1091  ;;  %v1192_v40 = vpop.permute.xlu0 %1191 }
 0x1f5   :  { %v1096_v24 = vadd.f32 %v1092_v19, %v1082_v60  ;;  %v1197_v55 = vadd.f32 %v1192_v40, %v1183_v52  ;;  %v1338_v19 = vmul.f32 %v1336_v35, %v2259_v48  ;;  %v1390_v48 = vstv %s1542_s5 }
 0x1f7   :  { %v1102_v63 = vadd.f32 %v1100_v38, %v1096_v24  ;;  %v1203_v51 = vadd.f32 %v1201_v18, %v1197_v55 }
 0x1f8   :  { %v1194_v0 = vpop.permute.xlu1 %1193  ;;  %v1294_v28 = vpop.permute.xlu0 %1293 }
 0x1f9   :  { %v1198_v1 = vadd.f32 %v1194_v0, %v1184_v37  ;;  %v1299_v2 = vadd.f32 %v1294_v28, %v1285_v59  ;;  %v1370_v59 = vstv %s1369_s4 }
 0x1fb   :  { %v1204_v7 = vadd.f32 %v1202_v13, %v1198_v1  ;;  %v1305_v8 = vadd.f32 %v1303_v5, %v1299_v2 }
 0x1fc   :  { %v1296_v45 = vpop.permute.xlu1 %1295  ;;  %v1110_v12 = vpop.permute.xlu0 %1109 }
 0x1fd   :  { %v1300_v32 = vadd.f32 %v1296_v45, %v1286_v3  ;;  %v1115_v58 = vadd.f32 %v1110_v12, %v1101_v54 }
 0x1ff   :  { %v1306_v15 = vadd.f32 %v1304_v23, %v1300_v32  ;;  %v1409_v23 = vstv %s2348_s6 }
 0x200   :  { %v1112_v16 = vpop.permute.xlu1 %1111  ;;  %v1212_v22 = vpop.permute.xlu0 %1211 }
 0x201   :  { %v1116_v30 = vadd.f32 %v1112_v16, %v1102_v63  ;;  %v1217_v6 = vadd.f32 %v1212_v22, %v1203_v51 }
 0x204   :  { %v1214_v17 = vpop.permute.xlu1 %1213  ;;  %v1314_v61 = vpop.permute.xlu0 %1313 }
 0x205   :  { %v1218_v41 = vadd.f32 %v1214_v17, %v1204_v7  ;;  %v1319_v42 = vadd.f32 %v1314_v61, %v1305_v8 }
 0x208   :  { %v1316_v21 = vpop.permute.xlu1 %1315  ;;  %v1124_v62 = vpop.permute.xlu0 %1123 }
 0x209   :  { %v1129_v25 = vadd.f32 %v1124_v62, %v1115_v58  ;;  %v1320_v47 = vadd.f32 %v1316_v21, %v1306_v15 }
 0x20b   :  { %v1135_v9 = vadd.f32 %v1133_v26, %v1129_v25 }
 0x20c   :  { %v1126_v36 = vpop.permute.xlu1 %1125  ;;  %v1226_v31 = vpop.permute.xlu0 %1225 }
 0x20d   :  { %v1130_v27 = vadd.f32 %v1126_v36, %v1116_v30  ;;  %v1231_v34 = vadd.f32 %v1226_v31, %v1217_v6 }
 0x20f   :  { %v1136_v14 = vadd.f32 %v1134_v11, %v1130_v27  ;;  %v1237_v43 = vadd.f32 %v1235_v57, %v1231_v34 }
 0x210   :  { %v1228_v4 = vpop.permute.xlu1 %1227  ;;  %v1328_v44 = vpop.permute.xlu0 %1327 }
 0x211   :  { %v1232_v10 = vadd.f32 %v1228_v4, %v1218_v41  ;;  %v1333_v53 = vadd.f32 %v1328_v44, %v1319_v42 }
 0x213   :  { %v1238_v49 = vadd.f32 %v1236_v46, %v1232_v10  ;;  %v1339_v50 = vadd.f32 %v1337_v33, %v1333_v53 }
 0x214   :  { %v1330_v60 = vpop.permute.xlu1 %1329  ;;  %v1144_v52 = vpop.permute.xlu0 %1143 }
 0x215   :  { %v1334_v54 = vadd.f32 %v1330_v60, %v1320_v47  ;;  %v1149_v56 = vadd.f32 %v1144_v52, %v1135_v9 }
 0x217   :  { %v1340_v40 = vadd.f32 %v1338_v19, %v1334_v54 }
 0x218   :  { %v1146_v24 = vpop.permute.xlu1 %1145  ;;  %v1246_v55 = vpop.permute.xlu0 %1245 }
 0x219   :  { %v1150_v51 = vadd.f32 %v1146_v24, %v1136_v14  ;;  %v1251_v0 = vadd.f32 %v1246_v55, %v1237_v43 }
 0x21c   :  { %v1248_v38 = vpop.permute.xlu1 %1247  ;;  %v1348_v18 = vpop.permute.xlu0 %1347 }
 0x21d   :  { %v1252_v7 = vadd.f32 %v1248_v38, %v1238_v49  ;;  %v1353_v8 = vadd.f32 %v1348_v18, %v1339_v50 }
 0x220   :  { %v1350_v37 = vpop.permute.xlu1 %1349  ;;  %v1158_v63 = vpop.permute.xlu0 %1157 }
 0x221   :  { %v1163_v39 = vadd.f32 %v1158_v63, %v1149_v56  ;;  %v1354_v20 = vadd.f32 %v1350_v37, %v1340_v40 }
 0x223   :  { %v1371_v28 = vadd.f32 %v1370_v59, %v1163_v39 }
 0x224   :  { %v1160_v1 = vpop.permute.xlu1 %1159  ;;  %v1260_v2 = vpop.permute.xlu0 %1259 }
 0x225   :  { %v1540_v13 = vmul.f32 -1.442695, %v1371_v28  ;;  %v1164_v5 = vadd.f32 %v1160_v1, %v1150_v51  ;;  %v1265_v3 = vadd.f32 %v1260_v2, %v1251_v0 }
 0x227   :  { %1558 = vpow2.f32 %v1540_v13  ;;  %v1372_v45 = vadd.f32 %v1370_v59, %v1164_v5  ;;  %v1391_v12 = vadd.f32 %v1390_v48, %v1265_v3 }
 0x228   :  { %v1262_v32 = vpop.permute.xlu1 %1261  ;;  %v1362_v15 = vpop.permute.xlu0 %1361 }
 0x229   :  { %v1541_v16 = vmul.f32 -1.442695, %v1372_v45  ;;  %v1543_v22 = vmul.f32 -1.442695, %v1391_v12  ;;  %v1266_v17 = vadd.f32 %v1262_v32, %v1252_v7  ;;  %v1367_v61 = vadd.f32 %v1362_v15, %v1353_v8 }
 0x22b   :  { %1560 = vpow2.f32 %v1541_v16  ;;  %v1392_v58 = vadd.f32 %v1390_v48, %v1266_v17  ;;  %v1410_v21 = vadd.f32 %v1409_v23, %v1367_v61 }
 0x22c   :  { %1562 = vpow2.f32 %v1543_v22  ;;  %v1364_v62 = vpop.permute.xlu1 %1363 }
 0x22d   :  { %v1544_v25 = vmul.f32 -1.442695, %v1392_v58  ;;  %v1548_v26 = vmul.f32 -1.442695, %v1410_v21  ;;  %v1368_v29 = vadd.f32 %v1364_v62, %v1354_v20 }
 0x22f   :  { %1564 = vpow2.f32 %v1544_v25  ;;  %v1411_v30 = vadd.f32 %v1409_v23, %v1368_v29 }
 0x230   :  { %1566 = vpow2.f32 %v1548_v26 }
 0x231   :  { %v1559_v6 = vpop.eup %1558  ;;  %v1549_v9 = vmul.f32 -1.442695, %v1411_v30 }
 0x232   :  { %v1379_v36 = vadd.f32 1.0, %v1559_v6 }
 0x233   :  { %1568 = vpow2.f32 %v1549_v9 }
 0x234   :  { %1570 = vrcp.f32 %v1379_v36 }
 0x235   :  { %v1561_v31 = vpop.eup %1560 }
 0x236   :  { %v1563_v27 = vpop.eup %1562  ;;  %v1380_v34 = vadd.f32 1.0, %v1561_v31 }
 0x237   :  { %v1399_v11 = vadd.f32 1.0, %v1563_v27 }
 0x238   :  { %1572 = vrcp.f32 %v1380_v34 }
 0x239   :  { %v1565_v57 = vpop.eup %1564  ;;  %1574 = vrcp.f32 %v1399_v11 }
 0x23a   :  { %v1567_v35 = vpop.eup %1566  ;;  %v1400_v41 = vadd.f32 1.0, %v1565_v57 }
 0x23b   :  { %v1418_v42 = vadd.f32 1.0, %v1567_v35 }
 0x23c   :  { %1576 = vrcp.f32 %v1400_v41 }
 0x23d   :  { %v1569_v14 = vpop.eup %1568  ;;  %1578 = vrcp.f32 %v1418_v42 }
 0x23e   :  { %v1571_v43 = vpop.eup %1570  ;;  %v1419_v4 = vadd.f32 1.0, %v1569_v14 }
 0x23f   :  { %1386 = vst.msk [vmem:[%s2375_s3] sm:$0xff] %vm1385_vm7, %v1571_v43 }
 0x240   :  { %1580 = vrcp.f32 %v1419_v4 }
 0x242   :  { %v1573_v44 = vpop.eup %1572 }
 0x243   :  { %v1575_v10 = vpop.eup %1574  ;;  %1388 = vst.msk [vmem:[%s2375_s3 + $0x8] sm:$0x3f] %vm1387_vm8, %v1573_v44 }
 0x244   :  { %1545 = vst.msk [vmem:[%s2375_s3 + $0x10] sm:$0xff] %vm1385_vm7, %v1575_v10 }
 0x246   :  { %v1577_v53 = vpop.eup %1576 }
 0x247   :  { %v1579_v46 = vpop.eup %1578  ;;  %1546 = vst.msk [vmem:[%s2375_s3 + $0x18] sm:$0x3f] %vm1387_vm8, %v1577_v53 }
 0x248   :  { %1550 = vst.msk [vmem:[%s2375_s3 + $0x20] sm:$0xff] %vm1385_vm7, %v1579_v46 }
 0x24a   :  { %v1581_v33 = vpop.eup %1580 }
 0x24b   :  { %1551 = vst.msk [vmem:[%s2375_s3 + $0x28] sm:$0x3f] %vm1387_vm8, %v1581_v33 }
 0x24c   :  { %1431 = vsyncpa [#allocation4], 1 }
 0x24d   :  { %1432 = vsyncpa [#allocation6], 1 }

</bundles_post_ra>
